<compile_context>
chip_gen: v5e
topology: v5e:2x2
jax: 0.10.0
libtpu: 0.0.40
codegen_flags: <defaults>
</compile_context>

<pallas_src>
import functools

import jax
import jax.numpy as jnp
from jax.experimental import pallas as pl
from jax.experimental.pallas import tpu as pltpu


def _round_up(x, m):
    return -(-x // m) * m


def _num_tensorcores():
    """Best-effort TensorCores-per-device count (v5e/v6e: 1, v7x: 2)."""
    try:
        info = pltpu.get_tpu_info()
        for attr in ("num_cores", "core_count", "num_tensorcores",
                     "tensor_cores_per_chip", "tensorcores_per_chip"):
            v = getattr(info, attr, None)
            if isinstance(v, int) and v > 0:
                return v
    except Exception:
        pass
    try:
        v = getattr(jax.devices()[0], "num_cores", None)
        if isinstance(v, int) and v > 0:
            return v
    except Exception:
        pass
    return 1


def _pick_batch_tiling(N, batch_tile, num_tc):
    """Large lane-dense tiles; single tile on 1-TC chips, balanced even split on multi-TC."""
    bt_max = max(128, _round_up(batch_tile, 128))
    n_tiles = pl.cdiv(N, bt_max)
    if num_tc >= 2 and N >= 256 * num_tc:
        # Shard across TensorCores with equal-size tiles so both cores finish together.
        n_tiles = _round_up(max(n_tiles, num_tc), num_tc)
    bt = _round_up(pl.cdiv(N, n_tiles), 128)
    n_tiles = pl.cdiv(N, bt)
    return bt, n_tiles


def _mlp_kernel(layer_meta, hidden_bf16, x_ref, slab_ref, out_ref):
    """Fused MLP forward on transposed activations.

    x_ref:    (d_in, bt)   — batch along the lane axis.
    slab_ref: (R, 128)     — packed weights/biases; per-layer static offsets in layer_meta.
    out_ref:  (d_out, bt)

    layer_meta[i] = (mode, row_off, d_out_i, d_in_i):
      "vpu"    : tiny contraction (d_in <= 8): VPU broadcast-FMAs, W at [r:r+o, 0:i], b at col i.
      "reduce" : d_out == 1: W.T stored at [r:r+i, 0:1], b at [r, 1]; multiply + sublane reduce.
      "mxu"    : regular hidden layer: MXU matmul, W at [r:r+o, 0:i], b at col i.
    """
    n_layers = len(layer_meta)
    h = x_ref[...].astype(jnp.float32)                       # (d_in, bt)

    for li, (mode, r, o, i) in enumerate(layer_meta):
        if mode == "vpu":
            w = slab_ref[r:r + o, 0:i]                        # (o, i)
            b = slab_ref[r:r + o, i:i + 1]                    # (o, 1)
            acc = w[:, 0:1] * h[0:1, :]
            for k in range(1, i):
                acc = acc + w[:, k:k + 1] * h[k:k + 1, :]
            h = acc + b
        elif mode == "reduce":
            wt = slab_ref[r:r + i, 0:1]                       # (i, 1) == W.T
            b = slab_ref[r:r + 1, 1:2]                        # (1, 1)
            h = jnp.sum(wt * h, axis=0, keepdims=True) + b    # XLU cross-sublane reduce
        else:  # "mxu"
            w = slab_ref[r:r + o, 0:i]                        # (o, i)
            b = slab_ref[r:r + o, i:i + 1]                    # (o, 1)
            if hidden_bf16:
                h = jnp.dot(w.astype(jnp.bfloat16), h.astype(jnp.bfloat16),
                            preferred_element_type=jnp.float32) + b
            else:
                h = jnp.dot(w, h, preferred_element_type=jnp.float32) + b
        if li < n_layers - 1:                                 # tanh between Linears
            if hidden_bf16:
                h = jnp.tanh(h.astype(jnp.bfloat16)).astype(jnp.float32)
            else:
                h = jnp.tanh(h)

    out_ref[...] = h.astype(out_ref.dtype)


def dnn_forward(x, params, *, batch_tile=8192, hidden_bf16=False):
    """Run the MLP forward pass with a single fused Pallas TPU kernel.

    x:      (N, d_in) float32
    params: list of (W, b) in PyTorch layout: W (out_features, in_features), b (out_features,)
    returns (N, d_out), identical semantics to the nn.Sequential in `DNN`.
    """
    N, d_in = x.shape
    d_out = params[-1][0].shape[0]
    dims = [d_in] + [w.shape[0] for (w, _) in params]

    num_tc = _num_tensorcores()
    bt, n_tiles = _pick_batch_tiling(N, batch_tile, num_tc)

    # ---- pack all weights + biases into a single (8,128)-aligned f32 slab ----
    layer_meta = []
    placed = []
    row_off = 0
    max_cols = 1
    for (w, b) in params:
        o, i = w.shape
        w = jnp.asarray(w, jnp.float32)
        b = jnp.asarray(b, jnp.float32)
        if i <= 8:
            mode = "vpu"
            blk = jnp.concatenate([w, b.reshape(o, 1)], axis=1)          # (o, i+1)
        elif o == 1:
            mode = "reduce"
            blk = jnp.zeros((i, 2), jnp.float32)
            blk = blk.at[:, 0].set(w[0, :]).at[0, 1].set(b[0])           # (i, 2)
        else:
            mode = "mxu"
            blk = jnp.concatenate([w, b.reshape(o, 1)], axis=1)          # (o, i+1)
        layer_meta.append((mode, row_off, o, i))
        placed.append((row_off, blk))
        row_off += _round_up(blk.shape[0], 8)                 # keep sublane alignment
        max_cols = max(max_cols, blk.shape[1])

    slab_rows = _round_up(max(row_off, 8), 8)
    slab_cols = _round_up(max_cols, 128)
    slab = jnp.zeros((slab_rows, slab_cols), jnp.float32)
    for r, blk in placed:
        slab = slab.at[r:r + blk.shape[0], 0:blk.shape[1]].set(blk)

    # ---- lane-dense transposed input: (d_in, N), batch along the lane axis ----
    # (single transpose; no pad -> no extra HBM round trip; partial last block instead)
    x_t = x.astype(jnp.float32).T

    kernel = functools.partial(_mlp_kernel, tuple(layer_meta), bool(hidden_bf16))

    flops = 2 * N * sum(a * b2 for a, b2 in zip(dims[:-1], dims[1:]))
    transcendentals = N * sum(dims[1:-1])
    bytes_accessed = 4 * (N * (d_in + d_out) + slab.size)

    # Raise scoped VMEM only when a very large user-requested tile needs it.
    max_width = max(dims)
    vmem_est = 4 * bt * (2 * (d_in + d_out) + 3 * max_width) + 2 * 4 * int(slab.size)
    vmem_limit = None
    if vmem_est > 12 * 1024 * 1024:
        vmem_limit = int(min(_round_up(2 * vmem_est, 1 << 20), 64 * 1024 * 1024))

    out_t = pl.pallas_call(
        kernel,
        out_shape=jax.ShapeDtypeStruct((d_out, N), x.dtype),
        grid_spec=pl.GridSpec(
            grid=(n_tiles,),
            in_specs=[
                pl.BlockSpec((d_in, bt), lambda g: (0, g)),               # batch tiles
                pl.BlockSpec((slab_rows, slab_cols), lambda g: (0, 0)),   # resident weights
            ],
            out_specs=pl.BlockSpec((d_out, bt), lambda g: (0, g)),
        ),
        compiler_params=pltpu.CompilerParams(
            dimension_semantics=("parallel",),
            vmem_limit_bytes=vmem_limit,
        ),
        cost_estimate=pl.CostEstimate(
            flops=flops,
            transcendentals=transcendentals,
            bytes_accessed=bytes_accessed,
        ),
    )(x_t, slab)

    return out_t.T                                            # back to (N, d_out)


def init_params(layers, key):
    """PyTorch nn.Linear-style init: U(-1/sqrt(fan_in), 1/sqrt(fan_in)).

    W: (out_features, in_features), b: (out_features,) — same layout as PyTorch.
    """
    params = []
    for i in range(len(layers) - 1):
        fan_in, fan_out = layers[i], layers[i + 1]
        key, kw, kb = jax.random.split(key, 3)
        bound = 1.0 / (fan_in ** 0.5)
        w = jax.random.uniform(kw, (fan_out, fan_in), jnp.float32, -bound, bound)
        b = jax.random.uniform(kb, (fan_out,), jnp.float32, -bound, bound)
        params.append((w, b))
    return params


def dnn_forward_ref(x, params):
    """Pure-JAX reference of the same MLP (PyTorch layout: h @ W.T + b)."""
    h = x
    for i, (w, b) in enumerate(params):
        h = h @ w.T + b
        if i < len(params) - 1:
            h = jnp.tanh(h)
    return h


if __name__ == "__main__":
    # PINN-style MLP: 2 inputs (x, t) -> 3 hidden layers of 32 -> 1 output.
    layers = [2, 32, 32, 32, 1]
    N = 2000   # deliberately NOT a multiple of 128/bt: exercises the partial-block path

    key = jax.random.PRNGKey(0)
    key, kx = jax.random.split(key)
    x = jax.random.uniform(kx, (N, layers[0]), jnp.float32, -1.0, 1.0)
    params = init_params(layers, key)

    out = dnn_forward(x, params)          # default bt=8192 -> single (or TC-balanced) tile
    out = jax.block_until_ready(out)

    ref = dnn_forward_ref(x, params)
    assert out.shape == (N, layers[-1])
    err = float(jnp.max(jnp.abs(out - ref)))
    assert jnp.allclose(out, ref, atol=1e-4, rtol=1e-4), f"mismatch vs reference, max abs err={err}"

    print("KERNEL_OK")
</pallas_src>

<mosaic_0001>
module attributes {stable_mosaic.version = 11 : i64} {
  func.func @_mlp_kernel(%arg0: i32, %arg1: memref<2x2048xf32, #tpu.memory_space<vmem>>, %arg2: memref<128x128xf32, #tpu.memory_space<vmem>>, %arg3: memref<1x2048xf32, #tpu.memory_space<vmem>>) attributes {dimension_semantics = [#tpu.dimension_semantics<parallel>], iteration_bounds = array<i64: 1>, scalar_prefetch = 0 : i64, scratch_operands = 0 : i64, tpu.core_type = #tpu.core_type<tc>, window_params = [{transform_indices = @transform_0, window_bounds = array<i64: 2, 2048>}, {pipeline_mode = #tpu.pipeline_mode<synchronous>, transform_indices = @transform_1, window_bounds = array<i64: 128, 128>}, {transform_indices = @transform_2, window_bounds = array<i64: 1, 2048>}]} {
    %c0 = arith.constant 0 : index
    %c0_0 = arith.constant 0 : index
    %0 = vector.load %arg1[%c0, %c0_0] : memref<2x2048xf32, #tpu.memory_space<vmem>>, vector<2x2048xf32>
    %c0_1 = arith.constant 0 : index
    %c0_2 = arith.constant 0 : index
    %1 = vector.load %arg2[%c0_1, %c0_2] : memref<128x128xf32, #tpu.memory_space<vmem>>, vector<32x2xf32>
    %c0_3 = arith.constant 0 : index
    %c2 = arith.constant 2 : index
    %2 = vector.load %arg2[%c0_3, %c2] : memref<128x128xf32, #tpu.memory_space<vmem>>, vector<32x1xf32>
    %3 = vector.extract_strided_slice %1 {offsets = [0, 0], sizes = [32, 1], strides = [1, 1]} : vector<32x2xf32> to vector<32x1xf32>
    %4 = vector.extract_strided_slice %0 {offsets = [0, 0], sizes = [1, 2048], strides = [1, 1]} : vector<2x2048xf32> to vector<1x2048xf32>
    %5 = vector.broadcast %3 : vector<32x1xf32> to vector<32x2048xf32>
    %6 = vector.broadcast %4 : vector<1x2048xf32> to vector<32x2048xf32>
    %7 = arith.mulf %5, %6 : vector<32x2048xf32>
    %8 = vector.extract_strided_slice %1 {offsets = [0, 1], sizes = [32, 1], strides = [1, 1]} : vector<32x2xf32> to vector<32x1xf32>
    %9 = vector.extract_strided_slice %0 {offsets = [1, 0], sizes = [1, 2048], strides = [1, 1]} : vector<2x2048xf32> to vector<1x2048xf32>
    %10 = vector.broadcast %8 : vector<32x1xf32> to vector<32x2048xf32>
    %11 = vector.broadcast %9 : vector<1x2048xf32> to vector<32x2048xf32>
    %12 = arith.mulf %10, %11 : vector<32x2048xf32>
    %13 = arith.addf %7, %12 : vector<32x2048xf32>
    %14 = vector.broadcast %2 : vector<32x1xf32> to vector<32x2048xf32>
    %15 = arith.addf %13, %14 : vector<32x2048xf32>
    %16 = math.tanh %15 : vector<32x2048xf32>
    %c32 = arith.constant 32 : index
    %c0_4 = arith.constant 0 : index
    %17 = vector.load %arg2[%c32, %c0_4] : memref<128x128xf32, #tpu.memory_space<vmem>>, vector<32x32xf32>
    %c32_5 = arith.constant 32 : index
    %c32_6 = arith.constant 32 : index
    %18 = vector.load %arg2[%c32_5, %c32_6] : memref<128x128xf32, #tpu.memory_space<vmem>>, vector<32x1xf32>
    %cst = arith.constant dense<0.000000e+00> : vector<32x2048xf32>
    %19 = tpu.matmul %17, %16, %cst {dimension_numbers = #tpu.dot_dimension_numbers<[1], [0], [0], [1], [0, 0, 1, 1], [], []>} : vector<32x32xf32>, vector<32x2048xf32>, vector<32x2048xf32> -> vector<32x2048xf32>
    %20 = vector.broadcast %18 : vector<32x1xf32> to vector<32x2048xf32>
    %21 = arith.addf %19, %20 : vector<32x2048xf32>
    %22 = math.tanh %21 : vector<32x2048xf32>
    %c64 = arith.constant 64 : index
    %c0_7 = arith.constant 0 : index
    %23 = vector.load %arg2[%c64, %c0_7] : memref<128x128xf32, #tpu.memory_space<vmem>>, vector<32x32xf32>
    %c64_8 = arith.constant 64 : index
    %c32_9 = arith.constant 32 : index
    %24 = vector.load %arg2[%c64_8, %c32_9] : memref<128x128xf32, #tpu.memory_space<vmem>>, vector<32x1xf32>
    %cst_10 = arith.constant dense<0.000000e+00> : vector<32x2048xf32>
    %25 = tpu.matmul %23, %22, %cst_10 {dimension_numbers = #tpu.dot_dimension_numbers<[1], [0], [0], [1], [0, 0, 1, 1], [], []>} : vector<32x32xf32>, vector<32x2048xf32>, vector<32x2048xf32> -> vector<32x2048xf32>
    %26 = vector.broadcast %24 : vector<32x1xf32> to vector<32x2048xf32>
    %27 = arith.addf %25, %26 : vector<32x2048xf32>
    %28 = math.tanh %27 : vector<32x2048xf32>
    %c96 = arith.constant 96 : index
    %c0_11 = arith.constant 0 : index
    %29 = vector.load %arg2[%c96, %c0_11] : memref<128x128xf32, #tpu.memory_space<vmem>>, vector<32x1xf32>
    %c96_12 = arith.constant 96 : index
    %c1 = arith.constant 1 : index
    %30 = vector.load %arg2[%c96_12, %c1] : memref<128x128xf32, #tpu.memory_space<vmem>>, vector<1x1xf32>
    %31 = vector.broadcast %29 : vector<32x1xf32> to vector<32x2048xf32>
    %32 = arith.mulf %31, %28 : vector<32x2048xf32>
    %cst_13 = arith.constant dense<0.000000e+00> : vector<2048xf32>
    %33 = vector.multi_reduction <add>, %32, %cst_13 [0] : vector<32x2048xf32> to vector<2048xf32>
    %34 = vector.shape_cast %33 : vector<2048xf32> to vector<1x2048xf32>
    %35 = vector.broadcast %30 : vector<1x1xf32> to vector<1x2048xf32>
    %36 = arith.addf %34, %35 : vector<1x2048xf32>
    %c0_14 = arith.constant 0 : index
    %c0_15 = arith.constant 0 : index
    %37 = vector.load %arg3[%c0_14, %c0_15] : memref<1x2048xf32, #tpu.memory_space<vmem>>, vector<1x2048xf32>
    tpu.vector_store %arg3[%c0_14, %c0_15], %36 {strides = array<i32>} : memref<1x2048xf32, #tpu.memory_space<vmem>>, vector<1x2048xf32>,
    return
  }
  func.func @transform_0(%arg0: i32) -> (i32, i32) {
    %c0_i32 = arith.constant 0 : i32
    %c0_i32_0 = arith.constant 0 : i32
    return %c0_i32, %arg0 : i32, i32
  }
  func.func @transform_1(%arg0: i32) -> (i32, i32) {
    %c0_i32 = arith.constant 0 : i32
    %c0_i32_0 = arith.constant 0 : i32
    %c0_i32_1 = arith.constant 0 : i32
    return %c0_i32, %c0_i32_0 : i32, i32
  }
  func.func @transform_2(%arg0: i32) -> (i32, i32) {
    %c0_i32 = arith.constant 0 : i32
    %c0_i32_0 = arith.constant 0 : i32
    return %c0_i32, %arg0 : i32, i32
  }
}

</mosaic_0001>

<bundles_post_ra>
// kernel: tpu_custom_call.1
= control target key start
LH: loop header
LB: loop body
LE: loop exit
PB: predicated region body
PF: predicated region fallthrough
CT: control target
= control target key end

     0   :  { %7 = vsyncpa [#allocation3], 0  ;;  %s3788_s0 = inlined_call_operand.hbm [shape: f32[2,2000], index: 0, kind: input, shape index: {}]   ;;  %s3789_s1 = inlined_call_operand.hbm [shape: f32[128,128], index: 1, kind: input, shape index: {}]   ;;  %s3790_s2 = inlined_call_operand.hbm [shape: f32[1,2000], index: 2, kind: output, shape index: {}]  }
   0x1   :  { %8 = vsyncpa [#allocation6], 0 }
   0x2   :  { %9 = vsyncpa [#allocation4], 0  ;;  %s15_s11 = sshll.u32 %s3788_s0, 4  ;;  %s2588_s12 = smov [#allocation2]   ;;  %s16_s11 = int_to_ptr.hbm [resolvable:$true] %s15_s11 }
   0x3   :  { %s17_s13 = sshll.u32 %s2588_s12, 4  ;;  %s25_s16 = sshll.u32 %s3789_s1, 4  ;;  %s18_s13 = int_to_ptr.vmem [resolvable:$true] %s17_s13  ;;  %s26_s16 = int_to_ptr.hbm [resolvable:$true] %s25_s16 }
   0x4   :  { %20 = dma.hbm_to_vmem [thread:$0]  %s16_s11, 512, %s18_s13, [#allocation3]  }
   0x5   :  { %s2589_s17 = smov [#allocation5]   ;;  %s2590_s19 = smov 128  }
   0x6   :  { %s27_s18 = sshll.u32 %s2589_s17, 4  ;;  %s2591_s20 = smov 8   ;;  %s28_s18 = int_to_ptr.vmem [resolvable:$true] %s27_s18 }
   0x7   :  { %33 = dma.hbm_to_vmem [thread:$0]  %s26_s16, 2048, %s28_s18, [#allocation6], %s2590_s19, %s2590_s19, %s2591_s20  }
   0x8   :  { %2582 = dma.done.wait [#allocation3], 512  }
   0x9   :  { %2583 = vsyncadd [#allocation3], 4294966784 }
   0xa   :  { %2584 = dma.done.wait [#allocation6], 2048  }
   0xb   :  { %2585 = vsyncadd [#allocation6], 4294965248  ;;  %v3793_v0 = vmov 0   ;;  %v49_v1 = vld [vmem:[#allocation5 + $0x18] sm:$0xff]  ;;  %v48_v2 = vld [vmem:[#allocation5 + $0x10] sm:$0xff]  ;;  %v3791_v4 = vmov 1  }
   0xc   :  { %2109 = vset.pattern.permute.xlu1 %v3793_v0  ;;  %2107 = vset.pattern.permute.xlu0 %v3793_v0  ;;  %v47_v3 = vld [vmem:[#allocation5 + $0x8] sm:$0xff]  ;;  %v46_v5 = vld [vmem:[#allocation5] sm:$0xff]  ;;  %v2594_v6 = vmov 2   ;;  %vm546_vm0 = vcmask 261120   ;;  %vm1927_vm1 = vcmask 1040384   ;;  %vm1929_vm2 = vcmask 1042434  }
   0xd   :  { %2111 = vset.pattern.permute.xlu2 %v3793_v0  ;;  %67 = vperm.xlu0 %2107, %v49_v1   ;;  %v42_v8 = vld [vmem:[#allocation2] sm:$0xff]  ;;  %v43_v11 = vld [vmem:[#allocation2 + $0x8] sm:$0xff]  ;;  %vm1931_vm3 = vcmask 1041408   ;;  %vm1933_vm4 = vcmask 1044484   ;;  %vm1935_vm5 = vcmask 1046534   ;;  %vm1937_vm6 = vcmask 1045508  }
   0xe   :  { %62 = vperm.xlu1 %2109, %v48_v2   ;;  %57 = vperm.xlu2 %2111, %v47_v3   ;;  %v74_v9 = vperm.slane %v42_v8, 0  ;;  %v75_v10 = vperm.slane %v42_v8, 2  ;;  %v76_v12 = vperm.slane %v42_v8, 4  ;;  %v77_v13 = vperm.slane %v42_v8, 6  ;;  %s2596_s0 = smov [#allocation7]   ;;  %s1959_s23 = sshll.u32 %s3790_s2, 4  ;;  %s1960_s23 = int_to_ptr.hbm [resolvable:$true] %s1959_s23 }
   0xf   :  { %v202_v15 = vperm.slane %v42_v8, 1  ;;  %v203_v16 = vperm.slane %v42_v8, 3  ;;  %v204_v17 = vperm.slane %v42_v8, 5  ;;  %v205_v18 = vperm.slane %v42_v8, 7  ;;  %s1957_s1 = sshll.u32 %s2596_s0, 4  ;;  %s1958_s1 = int_to_ptr.vmem [resolvable:$true] %s1957_s1 }
  0x10   :  { %v78_v19 = vperm.slane %v43_v11, 0  ;;  %v206_v20 = vperm.slane %v43_v11, 1  ;;  %v106_v21 = vperm.slane %v74_v9, 0  ;;  %v107_v22 = vperm.slane %v75_v10, 0 }
  0x11   :  { %v108_v23 = vperm.slane %v76_v12, 0  ;;  %v109_v24 = vperm.slane %v77_v13, 0  ;;  %v2629_v25 = vperm.slane %v202_v15, 1  ;;  %v2631_v26 = vperm.slane %v203_v16, 1 }
  0x12   :  { %v2633_v27 = vperm.slane %v204_v17, 1  ;;  %v2635_v28 = vperm.slane %v205_v18, 1  ;;  %v2637_v29 = vperm.slane %v78_v19, 0  ;;  %v2639_v30 = vperm.slane %v206_v20, 1 }
  0x13   :  { %v79_v31 = vperm.slane %v43_v11, 2  ;;  %v80_v32 = vperm.slane %v43_v11, 4  ;;  %v207_v35 = vperm.slane %v43_v11, 3  ;;  %v208_v36 = vperm.slane %v43_v11, 5 }
  0x14   :  { %v81_v39 = vperm.slane %v43_v11, 6  ;;  %v209_v40 = vperm.slane %v43_v11, 7  ;;  %v2694_v11 = vld [vmem:[#allocation2 + $0x10] sm:$0xff]  ;;  %vm1939_vm7 = vcmask 1043456  }
  0x15   :  { %2108 = vset.pattern.permute.xlu0 %v3791_v4  ;;  %v2659_v48 = vperm.slane %v79_v31, 0  ;;  %v2661_v49 = vperm.slane %v80_v32, 0  ;;  %v2663_v50 = vperm.slane %v207_v35, 1  ;;  %v2665_v51 = vperm.slane %v208_v36, 1 }
  0x16   :  { %2110 = vset.pattern.permute.xlu1 %v3791_v4  ;;  %199 = vperm.xlu0 %2108, %v49_v1   ;;  %v2667_v52 = vperm.slane %v81_v39, 0  ;;  %v2669_v53 = vperm.slane %v209_v40, 1  ;;  %v82_v31 = vperm.slane %v2694_v11, 0  ;;  %v210_v35 = vperm.slane %v2694_v11, 1 }
  0x17   :  { %195 = vperm.xlu1 %2110, %v48_v2   ;;  %2112 = vset.pattern.permute.xlu2 %v3791_v4 }
  0x18   :  { %191 = vperm.xlu2 %2112, %v47_v3  }
  0x1e   :  { %187 = vperm.xlu0 %2108, %v46_v5  }
  0x1f   :  { %2113 = vset.pattern.permute.xlu1 %v2594_v6 }
  0x20   :  { %391 = vperm.xlu1 %2113, %v49_v1   ;;  %2114 = vset.pattern.permute.xlu2 %v3793_v0 }
  0x21   :  { %52 = vperm.xlu2 %2114, %v46_v5  }
  0x26   :  { %2116 = vset.pattern.permute.xlu0 %v2594_v6 }
  0x27   :  { %379 = vperm.xlu0 %2116, %v46_v5  }
  0x28   :  { %387 = vperm.xlu1 %2113, %v48_v2  }
  0x29   :  { %2115 = vset.pattern.permute.xlu2 %v2594_v6 }
  0x2a   :  { %383 = vperm.xlu2 %2115, %v47_v3  }
  0x68   :  { %v2625_v7 = vpop.permute.xlu2 %57 }
  0x69   :  { %3801 = vst [vmem:[#allocation11_spill] sm:$0xff] %v2625_v7  ;;  %v138_v33 = vmul.f32 %v106_v21, %v2625_v7  ;;  %v139_v34 = vmul.f32 %v107_v22, %v2625_v7  ;;  %v140_v37 = vmul.f32 %v108_v23, %v2625_v7  ;;  %v141_v38 = vmul.f32 %v109_v24, %v2625_v7 }
  0x6a   :  { %v142_v46 = vmul.f32 %v2637_v29, %v2625_v7 }
  0x72   :  { %v2627_v14 = vpop.permute.xlu2 %191 }
  0x73   :  { %3802 = vst [vmem:[#allocation12_spill] sm:$0xff] %v2627_v14  ;;  %v266_v41 = vmul.f32 %v2629_v25, %v2627_v14  ;;  %v267_v42 = vmul.f32 %v2631_v26, %v2627_v14  ;;  %v268_v43 = vmul.f32 %v2633_v27, %v2627_v14  ;;  %v269_v44 = vmul.f32 %v2635_v28, %v2627_v14 }
  0x74   :  { %v270_v47 = vmul.f32 %v2639_v30, %v2627_v14  ;;  %v272_v39 = vmul.f32 %v2665_v51, %v2627_v14 }
  0x75   :  { %v330_v54 = vadd.f32 %v266_v41, %v138_v33  ;;  %v331_v55 = vadd.f32 %v267_v42, %v139_v34  ;;  %v332_v56 = vadd.f32 %v268_v43, %v140_v37  ;;  %v333_v57 = vadd.f32 %v269_v44, %v141_v38 }
  0x76   :  { %v334_v63 = vadd.f32 %v270_v47, %v142_v46  ;;  %v144_v38 = vmul.f32 %v2661_v49, %v2625_v7  ;;  %v2740_v41 = vmul.f32 %v2667_v52, %v2625_v7  ;;  %v2744_v42 = vmul.f32 %v2669_v53, %v2627_v14 }
  0x78   :  { %v336_v47 = vadd.f32 %v272_v39, %v144_v38  ;;  %v2771_v39 = vperm.slane %v210_v35, 1 }
  0x7b   :  { %v2653_v45 = vpop.permute.xlu2 %52 }
  0x7c   :  { %v2676_v60 = vmul.f32 %v106_v21, %v2653_v45  ;;  %v2679_v61 = vmul.f32 %v107_v22, %v2653_v45  ;;  %v2682_v62 = vmul.f32 %v108_v23, %v2653_v45  ;;  %v2688_v5 = vmul.f32 %v109_v24, %v2653_v45 }
  0x7f   :  { %v2673_v59 = vpop.permute.xlu0 %67 }
  0x80   :  { %v2671_v58 = vpop.permute.xlu1 %62  ;;  %v170_v1 = vmul.f32 %v106_v21, %v2673_v59  ;;  %v171_v2 = vmul.f32 %v107_v22, %v2673_v59  ;;  %v172_v3 = vmul.f32 %v108_v23, %v2673_v59  ;;  %v173_v6 = vmul.f32 %v109_v24, %v2673_v59 }
  0x81   :  { %3803 = vst [vmem:[#allocation13_spill] sm:$0xff] %v2671_v58  ;;  %v154_v8 = vmul.f32 %v106_v21, %v2671_v58  ;;  %v155_v9 = vmul.f32 %v107_v22, %v2671_v58  ;;  %v156_v10 = vmul.f32 %v108_v23, %v2671_v58  ;;  %v157_v12 = vmul.f32 %v109_v24, %v2671_v58 }
  0x82   :  { %v174_v13 = vmul.f32 %v2637_v29, %v2673_v59  ;;  %v175_v15 = vmul.f32 %v2659_v48, %v2673_v59  ;;  %v176_v16 = vmul.f32 %v2661_v49, %v2673_v59  ;;  %v177_v17 = vmul.f32 %v2667_v52, %v2673_v59 }
  0x83   :  { %v158_v18 = vmul.f32 %v2637_v29, %v2671_v58  ;;  %v2709_v19 = vmul.f32 %v2659_v48, %v2671_v58  ;;  %v2713_v20 = vmul.f32 %v2661_v49, %v2671_v58  ;;  %v2719_v22 = vmul.f32 %v2667_v52, %v2671_v58 }
  0x84   :  { %v2715_v21 = vpop.permute.xlu2 %383  ;;  %v143_v23 = vmul.f32 %v2659_v48, %v2625_v7  ;;  %v271_v24 = vmul.f32 %v2663_v50, %v2627_v14 }
  0x85   :  { %v410_v32 = vadd.f32 %v2715_v21, %v330_v54  ;;  %v411_v33 = vadd.f32 %v2715_v21, %v331_v55  ;;  %v412_v34 = vadd.f32 %v2715_v21, %v332_v56  ;;  %v413_v36 = vadd.f32 %v2715_v21, %v333_v57 }
  0x86   :  { %v335_v37 = vadd.f32 %v271_v24, %v143_v23  ;;  %v2736_v40 = vadd.f32 %v2715_v21, %v334_v63  ;;  %v2753_v54 = vperm.slane %v82_v31, 0 }
  0x87   :  { %2125 = vtanh.f32 %v410_v32 }
  0x88   :  { %3804 = vst [vmem:[#allocation14_spill] sm:$0xff] %v2736_v40  ;;  %v2746_v43 = vpop.permute.xlu0 %199  ;;  %2127 = vtanh.f32 %v411_v33  ;;  %v2751_v46 = vadd.f32 %v2715_v21, %v335_v37 }
  0x89   :  { %v2748_v44 = vpop.permute.xlu1 %195  ;;  %v298_v55 = vmul.f32 %v2629_v25, %v2746_v43  ;;  %v299_v56 = vmul.f32 %v2631_v26, %v2746_v43  ;;  %v300_v57 = vmul.f32 %v2633_v27, %v2746_v43  ;;  %v301_v63 = vmul.f32 %v2635_v28, %v2746_v43 }
  0x8a   :  { %3805 = vst [vmem:[#allocation15_spill] sm:$0xff] %v2751_v46  ;;  %v282_v23 = vmul.f32 %v2629_v25, %v2748_v44  ;;  %v283_v24 = vmul.f32 %v2631_v26, %v2748_v44  ;;  %v284_v31 = vmul.f32 %v2633_v27, %v2748_v44  ;;  %v285_v32 = vmul.f32 %v2635_v28, %v2748_v44 }
  0x8b   :  { %v362_v33 = vadd.f32 %v298_v55, %v170_v1  ;;  %v363_v37 = vadd.f32 %v299_v56, %v171_v2  ;;  %v364_v38 = vadd.f32 %v300_v57, %v172_v3  ;;  %v365_v4 = vadd.f32 %v301_v63, %v173_v6 }
  0x8c   :  { %v2773_v0 = vadd.f32 %v282_v23, %v154_v8  ;;  %v2775_v14 = vadd.f32 %v283_v24, %v155_v9  ;;  %v2777_v7 = vadd.f32 %v284_v31, %v156_v10  ;;  %v2781_v40 = vadd.f32 %v285_v32, %v157_v12 }
  0x8d   :  { %v2779_v46 = vpop.eup %2125  ;;  %2129 = vtanh.f32 %v412_v34  ;;  %v302_v58 = vmul.f32 %v2639_v30, %v2746_v43  ;;  %v303_v1 = vmul.f32 %v2663_v50, %v2746_v43  ;;  %v304_v3 = vmul.f32 %v2665_v51, %v2746_v43 }
  0x8e   :  { %v2787_v2 = vpop.eup %2127  ;;  %2131 = vtanh.f32 %v413_v36  ;;  %v305_v6 = vmul.f32 %v2669_v53, %v2746_v43  ;;  %v286_v8 = vmul.f32 %v2639_v30, %v2748_v44  ;;  %v287_v12 = vmul.f32 %v2663_v50, %v2748_v44 }
  0x8f   :  { %v366_v9 = vadd.f32 %v302_v58, %v174_v13  ;;  %v367_v10 = vadd.f32 %v303_v1, %v175_v15  ;;  %v288_v34 = vmul.f32 %v2665_v51, %v2748_v44  ;;  %v368_v36 = vadd.f32 %v304_v3, %v176_v16 }
  0x90   :  { %v2799_v35 = vpop.permute.xlu0 %187  ;;  %v369_v55 = vadd.f32 %v305_v6, %v177_v17  ;;  %v350_v56 = vadd.f32 %v286_v8, %v158_v18  ;;  %v289_v57 = vmul.f32 %v2669_v53, %v2748_v44  ;;  %v126_v3 = vmul.f32 %v2637_v29, %v2653_v45 }
  0x91   :  { %v250_v58 = vmul.f32 %v2629_v25, %v2799_v35  ;;  %v251_v13 = vmul.f32 %v2631_v26, %v2799_v35  ;;  %v252_v15 = vmul.f32 %v2633_v27, %v2799_v35  ;;  %v253_v23 = vmul.f32 %v2635_v28, %v2799_v35 }
  0x92   :  { %v2803_v63 = vpop.permute.xlu1 %391  ;;  %v254_v6 = vmul.f32 %v2639_v30, %v2799_v35  ;;  %v256_v30 = vmul.f32 %v2665_v51, %v2799_v35 }
  0x93   :  { %v442_v16 = vadd.f32 %v2803_v63, %v362_v33  ;;  %v443_v17 = vadd.f32 %v2803_v63, %v363_v37  ;;  %v444_v18 = vadd.f32 %v2803_v63, %v364_v38  ;;  %v445_v24 = vadd.f32 %v2803_v63, %v365_v4  ;;  %v2817_v31 = vpop.eup %2129 }
  0x94   :  { %v314_v25 = vadd.f32 %v250_v58, %v2676_v60  ;;  %v315_v26 = vadd.f32 %v251_v13, %v2679_v61  ;;  %v316_v32 = vadd.f32 %v252_v15, %v2682_v62  ;;  %v317_v27 = vadd.f32 %v253_v23, %v2688_v5  ;;  %v2823_v1 = vpop.eup %2131 }
  0x95   :  { %2133 = vtanh.f32 %v442_v16  ;;  %v446_v28 = vadd.f32 %v2803_v63, %v366_v9  ;;  %v447_v33 = vadd.f32 %v2803_v63, %v367_v10  ;;  %v2828_v37 = vadd.f32 %v2803_v63, %v368_v36 }
  0x96   :  { %2135 = vtanh.f32 %v443_v17  ;;  %v2831_v4 = vadd.f32 %v2803_v63, %v369_v55  ;;  %v351_v60 = vadd.f32 %v287_v12, %v2709_v19  ;;  %v352_v61 = vadd.f32 %v288_v34, %v2713_v20 }
  0x97   :  { %2137 = vtanh.f32 %v444_v18  ;;  %v353_v62 = vadd.f32 %v289_v57, %v2719_v22  ;;  %v2837_v5 = vadd.f32 %v2715_v21, %v336_v47  ;;  %v337_v38 = vadd.f32 %v2744_v42, %v2740_v41 }
  0x98   :  { %2139 = vtanh.f32 %v445_v24  ;;  %v127_v19 = vmul.f32 %v2659_v48, %v2653_v45  ;;  %v255_v22 = vmul.f32 %v2663_v50, %v2799_v35  ;;  %v128_v41 = vmul.f32 %v2661_v49, %v2653_v45 }
  0x99   :  { %2141 = vtanh.f32 %v446_v28  ;;  %v2848_v20 = vadd.f32 %v2715_v21, %v337_v38  ;;  %v2856_v47 = vpop.permute.xlu0 %379  ;;  %v318_v29 = vadd.f32 %v254_v6, %v126_v3  ;;  %v129_v48 = vmul.f32 %v2667_v52, %v2653_v45 }
  0x9a   :  { %v2854_v42 = vpop.permute.xlu1 %387  ;;  %2143 = vtanh.f32 %v447_v33  ;;  %v394_v51 = vadd.f32 %v2856_v47, %v314_v25  ;;  %v395_v34 = vadd.f32 %v2856_v47, %v315_v26  ;;  %v396_v52 = vadd.f32 %v2856_v47, %v316_v32 }
  0x9b   :  { %v2134_v8 = vpop.eup %2133  ;;  %v426_v9 = vadd.f32 %v2854_v42, %v2773_v0  ;;  %v427_v50 = vadd.f32 %v2854_v42, %v2775_v14  ;;  %v428_v49 = vadd.f32 %v2854_v42, %v2777_v7  ;;  %v429_v10 = vadd.f32 %v2854_v42, %v2781_v40 }
  0x9c   :  { %v2136_v12 = vpop.eup %2135  ;;  %567 = vmatpush.msra.mxu0 %v2134_v8  ;;  %v397_v36 = vadd.f32 %v2856_v47, %v317_v27  ;;  %v430_v14 = vadd.f32 %v2854_v42, %v350_v56  ;;  %v431_v7 = vadd.f32 %v2854_v42, %v351_v60  ;;  %v2877_v55 = vadd.f32 %v2854_v42, %v352_v61 }
  0x9d   :  { %v2138_v0 = vpop.eup %2137  ;;  %596 = vmatpush.msra.mxu1 %v2136_v12  ;;  %2145 = vtanh.f32 %v426_v9  ;;  %v2880_v57 = vadd.f32 %v2854_v42, %v353_v62  ;;  %v2883_v58 = vadd.f32 %v2856_v47, %v318_v29  ;;  %v319_v13 = vadd.f32 %v255_v22, %v127_v19  ;;  %v2933_v12 = vld [vmem:[#allocation5 + $0x20] sm:$0xff] }
  0x9e   :  { %v2140_v40 = vpop.eup %2139  ;;  %625 = vmatpush.msra.mxu2 %v2138_v0  ;;  %2147 = vtanh.f32 %v427_v50  ;;  %v320_v56 = vadd.f32 %v256_v30, %v128_v41  ;;  %v257_v23 = vmul.f32 %v2669_v53, %v2799_v35  ;;  %v178_v16 = vmul.f32 %v2753_v54, %v2673_v59 }
  0x9f   :  { %v2885_v15 = vpop.eup %2141  ;;  %654 = vmatpush.msra.mxu3 %v2140_v40  ;;  %2149 = vtanh.f32 %v428_v49  ;;  %v2894_v18 = vadd.f32 %v2856_v47, %v319_v13  ;;  %v306_v24 = vmul.f32 %v2771_v39, %v2746_v43  ;;  %v83_v25 = vperm.slane %v2694_v11, 2  ;;  %v3806_v49 = vld [vmem:[#allocation13_spill] sm:$0xff] }
  0xa0   :  { %v2891_v17 = vpop.eup %2143  ;;  %2151 = vtanh.f32 %v429_v10  ;;  %v2900_v26 = vadd.f32 %v2856_v47, %v320_v56  ;;  %v321_v32 = vadd.f32 %v257_v23, %v129_v48  ;;  %v211_v53 = vperm.slane %v2694_v11, 3  ;;  %v3807_v56 = vld [vmem:[#allocation14_spill] sm:$0xff] }
  0xa1   :  { %2153 = vtanh.f32 %v394_v51  ;;  %v370_v27 = vadd.f32 %v306_v24, %v178_v16  ;;  %v2903_v28 = vperm.slane %v83_v25, 0  ;;  %v84_v33 = vperm.slane %v2694_v11, 4  ;;  %v3808_v25 = vld [vmem:[#allocation15_spill] sm:$0xff] }
  0xa2   :  { %2155 = vtanh.f32 %v395_v34  ;;  %v2907_v61 = vadd.f32 %v2856_v47, %v321_v32  ;;  %v2909_v62 = vperm.slane %v211_v53, 1  ;;  %v212_v38 = vperm.slane %v2694_v11, 5 }
  0xa3   :  { %v2146_v60 = vpop.eup %2145  ;;  %2157 = vtanh.f32 %v396_v52  ;;  %v2913_v6 = vadd.f32 %v2803_v63, %v370_v27  ;;  %v179_v19 = vmul.f32 %v2903_v28, %v2673_v59  ;;  %v2917_v22 = vperm.slane %v84_v33, 0 }
  0xa4   :  { %v2148_v3 = vpop.eup %2147  ;;  %568 = vmatpush.msra.mxu0 %v2146_v60  ;;  %2159 = vtanh.f32 %v397_v36  ;;  %v307_v29 = vmul.f32 %v2909_v62, %v2746_v43  ;;  %v2922_v30 = vperm.slane %v212_v38, 1  ;;  %v85_v48 = vperm.slane %v2694_v11, 6 }
  0xa5   :  { %v2150_v41 = vpop.eup %2149  ;;  %597 = vmatpush.msra.mxu1 %v2148_v3  ;;  %2161 = vtanh.f32 %v2828_v37  ;;  %v180_v9 = vmul.f32 %v2917_v22, %v2673_v59  ;;  %v213_v50 = vperm.slane %v2694_v11, 7  ;;  %v162_v37 = vmul.f32 %v2753_v54, %v3806_v49 }
  0xa6   :  { %v2152_v8 = vpop.eup %2151  ;;  %626 = vmatpush.msra.mxu2 %v2150_v41  ;;  %569 = vmatpush.msra.mxu0 %v2779_v46  ;;  %2163 = vtanh.f32 %v2831_v4  ;;  %v371_v51 = vadd.f32 %v307_v29, %v179_v19  ;;  %v308_v46 = vmul.f32 %v2922_v30, %v2746_v43  ;;  %v2937_v4 = vperm.slane %v85_v48, 0 }
  0xa7   :  { %v2154_v10 = vpop.eup %2153  ;;  %655 = vmatpush.msra.mxu3 %v2152_v8  ;;  %598 = vmatpush.msra.mxu1 %v2787_v2  ;;  %2165 = vtanh.f32 %v430_v14  ;;  %v2940_v11 = vperm.slane %v213_v50, 1  ;;  %v290_v52 = vmul.f32 %v2771_v39, %v2748_v44  ;;  %v163_v2 = vmul.f32 %v2903_v28, %v3806_v49 }
  0xa8   :  { %v2156_v34 = vpop.eup %2155  ;;  %627 = vmatpush.msra.mxu2 %v2817_v31  ;;  %570 = vmatpush.msra.mxu0 %v2154_v10  ;;  %2167 = vtanh.f32 %v431_v7  ;;  %v2949_v0 = vadd.f32 %v2803_v63, %v371_v51  ;;  %v372_v31 = vadd.f32 %v308_v46, %v180_v9  ;;  %v181_v14 = vmul.f32 %v2937_v4, %v2673_v59  ;;  %v3810_v9 = vld [vmem:[#allocation12_spill] sm:$0xff] }
  0xa9   :  { %v2158_v36 = vpop.eup %2157  ;;  %656 = vmatpush.msra.mxu3 %v2823_v1  ;;  %599 = vmatpush.msra.mxu1 %v2156_v34  ;;  %2169 = vtanh.f32 %v2877_v55  ;;  %v309_v1 = vmul.f32 %v2940_v11, %v2746_v43  ;;  %v354_v40 = vadd.f32 %v290_v52, %v162_v37  ;;  %v291_v55 = vmul.f32 %v2909_v62, %v2748_v44  ;;  %v2999_v37 = vld [vmem:[#allocation5 + $0x28] sm:$0xff] }
  0xaa   :  { %v2160_v7 = vpop.eup %2159  ;;  %628 = vmatpush.msra.mxu2 %v2158_v36  ;;  %1970 = vmatmul.msk.f32.vlgmr.msra.gmra.mxu0 %vm546_vm0, %v2933_v12  ;;  %2171 = vtanh.f32 %v2880_v57  ;;  %v2964_v23 = vadd.f32 %v2803_v63, %v372_v31  ;;  %v164_v57 = vmul.f32 %v2917_v22, %v3806_v49  ;;  %v292_v16 = vmul.f32 %v2922_v30, %v2748_v44 }
  0xab   :  { %v2162_v13 = vpop.eup %2161  ;;  %657 = vmatpush.msra.mxu3 %v2160_v7  ;;  %1974 = vmatmul.msk.f32.vlgmr.msra.gmra.mxu1 %vm546_vm0, %v2933_v12  ;;  %2173 = vtanh.f32 %v3807_v56  ;;  %v373_v32 = vadd.f32 %v309_v1, %v181_v14  ;;  %v2976_v53 = vadd.f32 %v2854_v42, %v354_v40  ;;  %v355_v27 = vadd.f32 %v291_v55, %v163_v2 }
  0xac   :  { %v2164_v24 = vpop.eup %2163  ;;  %1978 = vmatmul.msk.f32.vlgmr.msra.gmra.mxu2 %vm546_vm0, %v2933_v12  ;;  %1982 = vmatmul.msk.f32.vlgmr.msra.gmra.mxu3 %vm546_vm0, %v2933_v12  ;;  %2175 = vtanh.f32 %v3808_v25  ;;  %v356_v60 = vadd.f32 %v292_v16, %v164_v57  ;;  %v165_v38 = vmul.f32 %v2937_v4, %v3806_v49  ;;  %v293_v3 = vmul.f32 %v2940_v11, %v2748_v44  ;;  %v3041_v25 = vld [vmem:[#allocation2 + $0x18] sm:$0xff] }
  0xad   :  { %v2166_v33 = vpop.eup %2165  ;;  %683 = vmatpush.msrb.mxu0 %v2885_v15  ;;  %712 = vmatpush.msrb.mxu1 %v2891_v17  ;;  %2177 = vtanh.f32 %v2837_v5  ;;  %v453_v41 = vadd.f32 %v2803_v63, %v373_v32  ;;  %v2988_v15 = vadd.f32 %v2854_v42, %v355_v27  ;;  %v3809_v17 = vld [vmem:[#allocation11_spill] sm:$0xff]  ;;  %v275_v51 = vmul.f32 %v2909_v62, %v3810_v9 }
  0xae   :  { %v2168_v19 = vpop.eup %2167  ;;  %741 = vmatpush.msrb.mxu2 %v2162_v13  ;;  %770 = vmatpush.msrb.mxu3 %v2164_v24  ;;  %2179 = vtanh.f32 %v2848_v20  ;;  %v146_v5 = vmul.f32 %v2753_v54, %v3809_v17  ;;  %v2994_v48 = vadd.f32 %v2854_v42, %v356_v60  ;;  %v357_v8 = vadd.f32 %v293_v3, %v165_v38  ;;  %v3054_v3 = vld [vmem:[#allocation5 + $0x30] sm:$0xff] }
  0xaf   :  { %v2170_v29 = vpop.eup %2169  ;;  %684 = vmatpush.msrb.mxu0 %v2166_v33  ;;  %713 = vmatpush.msrb.mxu1 %v2168_v19  ;;  %2181 = vtanh.f32 %v2883_v58  ;;  %v274_v20 = vmul.f32 %v2771_v39, %v3810_v9  ;;  %v147_v10 = vmul.f32 %v2903_v28, %v3809_v17  ;;  %v148_v58 = vmul.f32 %v2917_v22, %v3809_v17  ;;  %v3048_v33 = vld [vmem:[#allocation5 + $0x38] sm:$0xff] }
  0xb0   :  { %v2172_v50 = vpop.eup %2171  ;;  %742 = vmatpush.msrb.mxu2 %v2170_v29  ;;  %2183 = vtanh.f32 %v2894_v18  ;;  %v437_v34 = vadd.f32 %v2854_v42, %v357_v8  ;;  %v276_v18 = vmul.f32 %v2922_v30, %v3810_v9  ;;  %v149_v31 = vmul.f32 %v2937_v4, %v3809_v17 }
  0xb1   :  { %v2174_v46 = vpop.eup %2173  ;;  %771 = vmatpush.msrb.mxu3 %v2172_v50  ;;  %2185 = vtanh.f32 %v2900_v26  ;;  %v338_v52 = vadd.f32 %v274_v20, %v146_v5  ;;  %v339_v36 = vadd.f32 %v275_v51, %v147_v10  ;;  %v277_v14 = vmul.f32 %v2940_v11, %v3810_v9 }
  0xb2   :  { %v2176_v2 = vpop.eup %2175  ;;  %685 = vmatpush.msrb.mxu0 %v2174_v46  ;;  %2187 = vtanh.f32 %v2907_v61  ;;  %v340_v1 = vadd.f32 %v276_v18, %v148_v58  ;;  %v130_v61 = vmul.f32 %v2753_v54, %v2653_v45  ;;  %v259_v57 = vmul.f32 %v2909_v62, %v2799_v35 }
  0xb3   :  { %v2178_v7 = vpop.eup %2177  ;;  %714 = vmatpush.msrb.mxu1 %v2176_v2  ;;  %2189 = vtanh.f32 %v2913_v6  ;;  %1971 = vmatmul.msk.f32.gmra.mxu0 %vm546_vm0, %v2999_v37  ;;  %v418_v26 = vadd.f32 %v2715_v21, %v338_v52  ;;  %v419_v55 = vadd.f32 %v2715_v21, %v339_v36  ;;  %v341_v13 = vadd.f32 %v277_v14, %v149_v31 }
  0xb4   :  { %v2180_v40 = vpop.eup %2179  ;;  %743 = vmatpush.msrb.mxu2 %v2178_v7  ;;  %2191 = vtanh.f32 %v2949_v0  ;;  %1975 = vmatmul.msk.f32.gmra.mxu1 %vm546_vm0, %v2999_v37  ;;  %v258_v6 = vmul.f32 %v2771_v39, %v2799_v35  ;;  %v420_v54 = vadd.f32 %v2715_v21, %v340_v1  ;;  %v131_v0 = vmul.f32 %v2903_v28, %v2653_v45 }
  0xb5   :  { %v2182_v56 = vpop.eup %2181  ;;  %772 = vmatpush.msrb.mxu3 %v2180_v40  ;;  %2193 = vtanh.f32 %v2964_v23  ;;  %1979 = vmatmul.msk.f32.gmra.mxu2 %vm546_vm0, %v2999_v37  ;;  %v421_v39 = vadd.f32 %v2715_v21, %v341_v13  ;;  %v132_v24 = vmul.f32 %v2917_v22, %v2653_v45  ;;  %v260_v62 = vmul.f32 %v2922_v30, %v2799_v35 }
  0xb6   :  { %v2184_v16 = vpop.eup %2183  ;;  %686 = vmatpush.msrb.mxu0 %v2182_v56  ;;  %2195 = vtanh.f32 %v453_v41  ;;  %1983 = vmatmul.msk.f32.gmra.mxu3 %vm546_vm0, %v2999_v37  ;;  %v322_v23 = vadd.f32 %v258_v6, %v130_v61  ;;  %v323_v28 = vadd.f32 %v259_v57, %v131_v0  ;;  %v133_v27 = vmul.f32 %v2937_v4, %v2653_v45 }
  0xb7   :  { %v2186_v32 = vpop.eup %2185  ;;  %715 = vmatpush.msrb.mxu1 %v2184_v16  ;;  %2197 = vtanh.f32 %v2976_v53  ;;  %v261_v38 = vmul.f32 %v2940_v11, %v2799_v35  ;;  %v324_v4 = vadd.f32 %v260_v62, %v132_v24  ;;  %v2595_v19 = vmov 32  }
  0xb8   :  { %v2188_v60 = vpop.eup %2187  ;;  %744 = vmatpush.msrb.mxu2 %v2186_v32  ;;  %2199 = vtanh.f32 %v2988_v15  ;;  %v402_v22 = vadd.f32 %v2856_v47, %v322_v23  ;;  %v403_v30 = vadd.f32 %v2856_v47, %v323_v28  ;;  %2117 = vset.pattern.permute.xlu1 %v2595_v19  ;;  %v86_v41 = vperm.slane %v3041_v25, 0 }
  0xb9   :  { %v2190_v53 = vpop.eup %2189  ;;  %773 = vmatpush.msrb.mxu3 %v2188_v60  ;;  %2201 = vtanh.f32 %v2994_v48  ;;  %v325_v15 = vadd.f32 %v261_v38, %v133_v27  ;;  %543 = vperm.xlu1 %2117, %v3048_v33   ;;  %v214_v11 = vperm.slane %v3041_v25, 1  ;;  %v87_v29 = vperm.slane %v3041_v25, 2 }
  0xba   :  { %v2192_v5 = vpop.eup %2191  ;;  %799 = vmatpush.msra.mxu0 %v2190_v53  ;;  %2203 = vtanh.f32 %v437_v34  ;;  %v404_v48 = vadd.f32 %v2856_v47, %v324_v4  ;;  %v3065_v20 = vperm.slane %v86_v41, 0  ;;  %v215_v50 = vperm.slane %v3041_v25, 3  ;;  %2118 = vset.pattern.permute.xlu2 %v2595_v19 }
  0xbb   :  { %v2194_v8 = vpop.eup %2193  ;;  %828 = vmatpush.msra.mxu1 %v2192_v5  ;;  %2205 = vtanh.f32 %v418_v26  ;;  %1972 = vmatmul.msk.f32.gmra.mxu0 %vm546_vm0, %v3054_v3  ;;  %v405_v51 = vadd.f32 %v2856_v47, %v325_v15  ;;  %v3071_v58 = vperm.slane %v214_v11, 1  ;;  %v3073_v46 = vperm.slane %v87_v29, 0  ;;  %v3132_v29 = vld [vmem:[#allocation5 + $0x48] sm:$0xff] }
  0xbc   :  { %v2196_v10 = vpop.eup %2195  ;;  %857 = vmatpush.msra.mxu2 %v2194_v8  ;;  %2207 = vtanh.f32 %v419_v55  ;;  %1976 = vmatmul.msk.f32.gmra.mxu1 %vm546_vm0, %v3054_v3  ;;  %v182_v52 = vmul.f32 %v3065_v20, %v2673_v59  ;;  %v3079_v18 = vperm.slane %v215_v50, 1  ;;  %v88_v2 = vperm.slane %v3041_v25, 4 }
  0xbd   :  { %v2198_v34 = vpop.eup %2197  ;;  %886 = vmatpush.msra.mxu3 %v2196_v10  ;;  %2209 = vtanh.f32 %v420_v54  ;;  %1980 = vmatmul.msk.f32.gmra.mxu2 %vm546_vm0, %v3054_v3  ;;  %v310_v31 = vmul.f32 %v3071_v58, %v2746_v43  ;;  %v183_v14 = vmul.f32 %v3073_v46, %v2673_v59  ;;  %v216_v7 = vperm.slane %v3041_v25, 5 }
  0xbe   :  { %v2200_v36 = vpop.eup %2199  ;;  %800 = vmatpush.msra.mxu0 %v2198_v34  ;;  %2211 = vtanh.f32 %v421_v39  ;;  %1984 = vmatmul.msk.f32.gmra.mxu3 %vm546_vm0, %v3054_v3  ;;  %v311_v1 = vmul.f32 %v3079_v18, %v2746_v43  ;;  %v3091_v61 = vperm.slane %v88_v2, 0  ;;  %v89_v40 = vperm.slane %v3041_v25, 6 }
  0xbf   :  { %v2202_v26 = vpop.eup %2201  ;;  %829 = vmatpush.msra.mxu1 %v2200_v36  ;;  %2213 = vtanh.f32 %v402_v22  ;;  %v374_v13 = vadd.f32 %v310_v31, %v182_v52  ;;  %v3094_v6 = vperm.slane %v216_v7, 1  ;;  %v217_v56 = vperm.slane %v3041_v25, 7  ;;  %538 = vperm.xlu2 %2118, %v3054_v3  }
  0xc0   :  { %v2204_v55 = vpop.eup %2203  ;;  %858 = vmatpush.msra.mxu2 %v2202_v26  ;;  %2215 = vtanh.f32 %v403_v30  ;;  %v375_v0 = vadd.f32 %v311_v1, %v183_v14  ;;  %v184_v57 = vmul.f32 %v3091_v61, %v2673_v59  ;;  %v3100_v16 = vperm.slane %v89_v40, 0  ;;  %2119 = vset.pattern.permute.xlu0 %v2595_v19 }
  0xc1   :  { %v2206_v54 = vpop.eup %2205  ;;  %887 = vmatpush.msra.mxu3 %v2204_v55  ;;  %2217 = vtanh.f32 %v404_v48  ;;  %533 = vperm.xlu1 %2117, %v2999_v37   ;;  %v454_v23 = vadd.f32 %v2803_v63, %v374_v13  ;;  %v312_v24 = vmul.f32 %v3094_v6, %v2746_v43  ;;  %v3106_v25 = vperm.slane %v217_v56, 1 }
  0xc2   :  { %v2208_v39 = vpop.eup %2207  ;;  %801 = vmatpush.msra.mxu0 %v2206_v54  ;;  %2219 = vtanh.f32 %v405_v51  ;;  %v455_v28 = vadd.f32 %v2803_v63, %v375_v0  ;;  %v185_v62 = vmul.f32 %v3100_v16, %v2673_v59  ;;  %v166_v27 = vmul.f32 %v3065_v20, %v3806_v49 }
  0xc3   :  { %v2210_v32 = vpop.eup %2209  ;;  %830 = vmatpush.msra.mxu1 %v2208_v39  ;;  %1973 = vmatmul.msk.f32.gmra.mxu0 %vm546_vm0, %v3048_v33  ;;  %v376_v22 = vadd.f32 %v312_v24, %v184_v57  ;;  %v313_v38 = vmul.f32 %v3106_v25, %v2746_v43  ;;  %v294_v53 = vmul.f32 %v3071_v58, %v2748_v44  ;;  %2221 = vtanh.f32 %v454_v23 }
  0xc4   :  { %v2212_v60 = vpop.eup %2211  ;;  %859 = vmatpush.msra.mxu2 %v2210_v32  ;;  %1977 = vmatmul.msk.f32.gmra.mxu1 %vm546_vm0, %v3048_v33  ;;  %v167_v59 = vmul.f32 %v3073_v46, %v3806_v49  ;;  %v295_v4 = vmul.f32 %v3079_v18, %v2748_v44  ;;  %v168_v19 = vmul.f32 %v3091_v61, %v3806_v49  ;;  %2223 = vtanh.f32 %v455_v28 }
  0xc5   :  { %v2214_v30 = vpop.eup %2213  ;;  %888 = vmatpush.msra.mxu3 %v2212_v60  ;;  %1981 = vmatmul.msk.f32.gmra.mxu2 %vm546_vm0, %v3048_v33  ;;  %v456_v43 = vadd.f32 %v2803_v63, %v376_v22  ;;  %v377_v5 = vadd.f32 %v313_v38, %v185_v62  ;;  %v358_v15 = vadd.f32 %v294_v53, %v166_v27  ;;  %v3181_v62 = vld [vmem:[#allocation5 + $0x58] sm:$0xff] }
  0xc6   :  { %v2216_v41 = vpop.eup %2215  ;;  %802 = vmatpush.msra.mxu0 %v2214_v30  ;;  %1985 = vmatmul.msk.f32.gmra.mxu3 %vm546_vm0, %v3048_v33  ;;  %v359_v8 = vadd.f32 %v295_v4, %v167_v59  ;;  %v296_v48 = vmul.f32 %v3094_v6, %v2748_v44  ;;  %v169_v50 = vmul.f32 %v3100_v16, %v3806_v49 }
  0xc7   :  { %v2218_v11 = vpop.eup %2217  ;;  %831 = vmatpush.msra.mxu1 %v2216_v41  ;;  %v297_v10 = vmul.f32 %v3106_v25, %v2748_v44  ;;  %2225 = vtanh.f32 %v456_v43  ;;  %v457_v34 = vadd.f32 %v2803_v63, %v377_v5  ;;  %v438_v52 = vadd.f32 %v2854_v42, %v358_v15  ;;  %528 = vperm.xlu2 %2118, %v2933_v12   ;;  %v3206_v5 = vld [vmem:[#allocation5 + $0x50] sm:$0xff] }
  0xc8   :  { %v2220_v51 = vpop.eup %2219  ;;  %860 = vmatpush.msra.mxu2 %v2218_v11  ;;  %v150_v2 = vmul.f32 %v3065_v20, %v3809_v17  ;;  %v439_v36 = vadd.f32 %v2854_v42, %v359_v8  ;;  %v360_v31 = vadd.f32 %v296_v48, %v168_v19  ;;  %v278_v44 = vmul.f32 %v3071_v58, %v3810_v9 }
  0xc9   :  { %889 = vmatpush.msra.mxu3 %v2220_v51  ;;  %v361_v49 = vadd.f32 %v297_v10, %v169_v50  ;;  %2227 = vtanh.f32 %v457_v34  ;;  %1094 = vperm.xlu1 %2117, %v3132_v29   ;;  %v151_v63 = vmul.f32 %v3073_v46, %v3809_v17  ;;  %v279_v14 = vmul.f32 %v3079_v18, %v3810_v9  ;;  %v2222_v26 = vpop.eup %2221 }
  0xca   :  { %v152_v7 = vmul.f32 %v3091_v61, %v3809_v17  ;;  %2229 = vtanh.f32 %v438_v52  ;;  %v440_v1 = vadd.f32 %v2854_v42, %v360_v31  ;;  %v342_v55 = vadd.f32 %v278_v44, %v150_v2  ;;  %v2224_v13 = vpop.eup %2223 }
  0xcb   :  { %1986 = vmatmul.msk.f32.vlgmr.msrb.gmra.mxu0 %vm546_vm0, %v2933_v12  ;;  %v441_v40 = vadd.f32 %v2854_v42, %v361_v49  ;;  %2231 = vtanh.f32 %v439_v36  ;;  %v343_v56 = vadd.f32 %v279_v14, %v151_v63  ;;  %v280_v54 = vmul.f32 %v3094_v6, %v3810_v9  ;;  %v3291_v36 = vld [vmem:[#allocation5 + $0x40] sm:$0xff] }
  0xcc   :  { %1990 = vmatmul.msk.f32.vlgmr.msrb.gmra.mxu1 %vm546_vm0, %v2933_v12  ;;  %915 = vmatpush.msrb.mxu0 %v2222_v26  ;;  %v153_v0 = vmul.f32 %v3100_v16, %v3809_v17  ;;  %2233 = vtanh.f32 %v440_v1  ;;  %v422_v42 = vadd.f32 %v2715_v21, %v342_v55  ;;  %v281_v57 = vmul.f32 %v3106_v25, %v3810_v9 }
  0xcd   :  { %1994 = vmatmul.msk.f32.vlgmr.msrb.gmra.mxu2 %vm546_vm0, %v2933_v12  ;;  %944 = vmatpush.msrb.mxu1 %v2224_v13  ;;  %v134_v39 = vmul.f32 %v3065_v20, %v2653_v45  ;;  %v2226_v23 = vpop.eup %2225  ;;  %2235 = vtanh.f32 %v441_v40  ;;  %v423_v17 = vadd.f32 %v2715_v21, %v343_v56  ;;  %v344_v24 = vadd.f32 %v280_v54, %v152_v7 }
  0xce   :  { %1998 = vmatmul.msk.f32.vlgmr.msrb.gmra.mxu3 %vm546_vm0, %v2933_v12  ;;  %v262_v32 = vmul.f32 %v3071_v58, %v2799_v35  ;;  %973 = vmatpush.msrb.mxu2 %v2226_v23  ;;  %2237 = vtanh.f32 %v422_v42  ;;  %v345_v28 = vadd.f32 %v281_v57, %v153_v0  ;;  %v135_v9 = vmul.f32 %v3073_v46, %v2653_v45 }
  0xcf   :  { %v263_v20 = vmul.f32 %v3079_v18, %v2799_v35  ;;  %v2228_v27 = vpop.eup %2227  ;;  %2239 = vtanh.f32 %v423_v17  ;;  %v424_v60 = vadd.f32 %v2715_v21, %v344_v24  ;;  %v136_v38 = vmul.f32 %v3091_v61, %v2653_v45  ;;  %1099 = vperm.xlu2 %2118, %v3206_v5   ;;  %1089 = vperm.xlu0 %2119, %v3291_v36  }
  0xd0   :  { %v326_v22 = vadd.f32 %v262_v32, %v134_v39  ;;  %v2230_v58 = vpop.eup %2229  ;;  %1002 = vmatpush.msrb.mxu3 %v2228_v27  ;;  %v425_v53 = vadd.f32 %v2715_v21, %v345_v28  ;;  %v264_v46 = vmul.f32 %v3094_v6, %v2799_v35  ;;  %v137_v18 = vmul.f32 %v3100_v16, %v2653_v45 }
  0xd1   :  { %v327_v30 = vadd.f32 %v263_v20, %v135_v9  ;;  %v2232_v59 = vpop.eup %2231  ;;  %916 = vmatpush.msrb.mxu0 %v2230_v58  ;;  %2241 = vtanh.f32 %v424_v60  ;;  %v265_v19 = vmul.f32 %v3106_v25, %v2799_v35  ;;  %1104 = vperm.xlu1 %2117, %v3181_v62   ;;  %v3811_v48 = vmov 0  }
  0xd2   :  { %v406_v4 = vadd.f32 %v2856_v47, %v326_v22  ;;  %v2234_v61 = vpop.eup %2233  ;;  %945 = vmatpush.msrb.mxu1 %v2232_v59  ;;  %2243 = vtanh.f32 %v425_v53  ;;  %v328_v41 = vadd.f32 %v264_v46, %v136_v38 }
  0xd3   :  { %v407_v21 = vadd.f32 %v2856_v47, %v327_v30  ;;  %1987 = vmatmul.msk.f32.gmra.mxu0 %vm546_vm0, %v2999_v37  ;;  %v2236_v45 = vpop.eup %2235  ;;  %974 = vmatpush.msrb.mxu2 %v2234_v61  ;;  %v329_v6 = vadd.f32 %v265_v19, %v137_v18 }
  0xd4   :  { %2245 = vtanh.f32 %v406_v4  ;;  %1991 = vmatmul.msk.f32.gmra.mxu1 %vm546_vm0, %v2999_v37  ;;  %v2238_v16 = vpop.eup %2237  ;;  %1003 = vmatpush.msrb.mxu3 %v2236_v45  ;;  %v408_v35 = vadd.f32 %v2856_v47, %v328_v41 }
  0xd5   :  { %2247 = vtanh.f32 %v407_v21  ;;  %1995 = vmatmul.msk.f32.gmra.mxu2 %vm546_vm0, %v2999_v37  ;;  %v2240_v25 = vpop.eup %2239  ;;  %917 = vmatpush.msrb.mxu0 %v2238_v16  ;;  %v409_v43 = vadd.f32 %v2856_v47, %v329_v6  ;;  %v1644_v21 = vld [vmem:[#allocation5 + $0x68] sm:$0xff] }
  0xd6   :  { %1999 = vmatmul.msk.f32.gmra.mxu3 %vm546_vm0, %v2999_v37  ;;  %946 = vmatpush.msrb.mxu1 %v2240_v25  ;;  %2249 = vtanh.f32 %v408_v35 }
  0xd7   :  { %v2242_v15 = vpop.eup %2241  ;;  %2251 = vtanh.f32 %v409_v43  ;;  %2120 = vset.pattern.permute.xlu2 %v3811_v48  ;;  %2121 = vset.pattern.permute.xlu0 %v3811_v48 }
  0xd8   :  { %v2244_v11 = vpop.eup %2243  ;;  %975 = vmatpush.msrb.mxu2 %v2242_v15  ;;  %1655 = vperm.xlu0 %2121, %v1644_v21  }
  0xd9   :  { %1004 = vmatpush.msrb.mxu3 %v2244_v11  ;;  %2122 = vset.pattern.permute.xlu1 %v3811_v48 }
  0xda   :  { %v2246_v8 = vpop.eup %2245 }
  0xdb   :  { %v2248_v50 = vpop.eup %2247  ;;  %918 = vmatpush.msrb.mxu0 %v2246_v8 }
  0xdc   :  { %947 = vmatpush.msrb.mxu1 %v2248_v50  ;;  %1988 = vmatmul.msk.f32.gmra.mxu0 %vm546_vm0, %v3054_v3  ;;  %v2250_v47 = vpop.eup %2249 }
  0xdd   :  { %1992 = vmatmul.msk.f32.gmra.mxu1 %vm546_vm0, %v3054_v3  ;;  %1996 = vmatmul.msk.f32.gmra.mxu2 %vm546_vm0, %v3054_v3  ;;  %v2252_v10 = vpop.eup %2251 }
  0xde   :  { %976 = vmatpush.msrb.mxu2 %v2250_v47  ;;  %2000 = vmatmul.msk.f32.gmra.mxu3 %vm546_vm0, %v3054_v3 }
  0xdf   :  { %1005 = vmatpush.msrb.mxu3 %v2252_v10 }
  0xe4   :  { %1989 = vmatmul.msk.f32.gmra.mxu0 %vm546_vm0, %v3048_v33 }
  0xe5   :  { %1993 = vmatmul.msk.f32.gmra.mxu1 %vm546_vm0, %v3048_v33  ;;  %1997 = vmatmul.msk.f32.gmra.mxu2 %vm546_vm0, %v3048_v33 }
  0xe6   :  { %2001 = vmatmul.msk.f32.gmra.mxu3 %vm546_vm0, %v3048_v33 }
  0xec   :  { %2002 = vmatmul.msk.f32.vlgmr.msra.gmra.mxu0 %vm546_vm0, %v2933_v12 }
  0xed   :  { %2006 = vmatmul.msk.f32.vlgmr.msra.gmra.mxu1 %vm546_vm0, %v2933_v12  ;;  %2010 = vmatmul.msk.f32.vlgmr.msra.gmra.mxu2 %vm546_vm0, %v2933_v12 }
  0xee   :  { %2014 = vmatmul.msk.f32.vlgmr.msra.gmra.mxu3 %vm546_vm0, %v2933_v12 }
  0xf4   :  { %2003 = vmatmul.msk.f32.gmra.mxu0 %vm546_vm0, %v2999_v37 }
  0xf5   :  { %2007 = vmatmul.msk.f32.gmra.mxu1 %vm546_vm0, %v2999_v37  ;;  %2011 = vmatmul.msk.f32.gmra.mxu2 %vm546_vm0, %v2999_v37 }
  0xf6   :  { %2015 = vmatmul.msk.f32.gmra.mxu3 %vm546_vm0, %v2999_v37 }
  0xfc   :  { %2004 = vmatmul.msk.f32.gmra.mxu0 %vm546_vm0, %v3054_v3 }
  0xfd   :  { %2008 = vmatmul.msk.f32.gmra.mxu1 %vm546_vm0, %v3054_v3  ;;  %2012 = vmatmul.msk.f32.gmra.mxu2 %vm546_vm0, %v3054_v3 }
  0xfe   :  { %2016 = vmatmul.msk.f32.gmra.mxu3 %vm546_vm0, %v3054_v3 }
 0x104   :  { %2005 = vmatmul.msk.f32.gmra.mxu0 %vm546_vm0, %v3048_v33 }
 0x105   :  { %2009 = vmatmul.msk.f32.gmra.mxu1 %vm546_vm0, %v3048_v33  ;;  %2013 = vmatmul.msk.f32.gmra.mxu2 %vm546_vm0, %v3048_v33 }
 0x106   :  { %2017 = vmatmul.msk.f32.gmra.mxu3 %vm546_vm0, %v3048_v33 }
 0x10c   :  { %2018 = vmatmul.msk.f32.vlgmr.msrb.gmra.mxu0 %vm546_vm0, %v2933_v12 }
 0x10d   :  { %2022 = vmatmul.msk.f32.vlgmr.msrb.gmra.mxu1 %vm546_vm0, %v2933_v12  ;;  %2026 = vmatmul.msk.f32.vlgmr.msrb.gmra.mxu2 %vm546_vm0, %v2933_v12 }
 0x10e   :  { %2030 = vmatmul.msk.f32.vlgmr.msrb.gmra.mxu3 %vm546_vm0, %v2933_v12 }
 0x114   :  { %2019 = vmatmul.msk.f32.gmra.mxu0 %vm546_vm0, %v2999_v37 }
 0x115   :  { %2023 = vmatmul.msk.f32.gmra.mxu1 %vm546_vm0, %v2999_v37  ;;  %2027 = vmatmul.msk.f32.gmra.mxu2 %vm546_vm0, %v2999_v37 }
 0x116   :  { %2031 = vmatmul.msk.f32.gmra.mxu3 %vm546_vm0, %v2999_v37 }
 0x119   :  { %v3296_v14 = vpop.permute.xlu2 %538 }
 0x11c   :  { %2020 = vmatmul.msk.f32.gmra.mxu0 %vm546_vm0, %v3054_v3 }
 0x11d   :  { %2024 = vmatmul.msk.f32.gmra.mxu1 %vm546_vm0, %v3054_v3  ;;  %2028 = vmatmul.msk.f32.gmra.mxu2 %vm546_vm0, %v3054_v3 }
 0x11e   :  { %2032 = vmatmul.msk.f32.gmra.mxu3 %vm546_vm0, %v3054_v3 }
 0x121   :  { %v3306_v42 = vpop.permute.xlu2 %528 }
 0x124   :  { %2021 = vmatmul.msk.f32.gmra.mxu0 %vm546_vm0, %v3048_v33 }
 0x125   :  { %2025 = vmatmul.msk.f32.gmra.mxu1 %vm546_vm0, %v3048_v33  ;;  %2029 = vmatmul.msk.f32.gmra.mxu2 %vm546_vm0, %v3048_v33 }
 0x126   :  { %2033 = vmatmul.msk.f32.gmra.mxu3 %vm546_vm0, %v3048_v33 }
 0x127   :  { %v572_v12 = vpop.f32.mrf.mxu0 }
 0x128   :  { %v601_v37 = vpop.f32.mrf.mxu1  ;;  %v573_v39 = vadd.f32 %v572_v12, %v3306_v42  ;;  %v1645_v12 = vld [vmem:[#allocation5 + $0x70] sm:$0xff] }
 0x129   :  { %v602_v23 = vadd.f32 %v601_v37, %v3306_v42  ;;  %v3812_v37 = vmov 1   ;;  %1660 = vperm.xlu1 %2122, %v1645_v12  }
 0x12a   :  { %2124 = vset.pattern.permute.xlu0 %v3812_v37 }
 0x12b   :  { %v3293_v3 = vpop.permute.xlu1 %543 }
 0x12f   :  { %v630_v51 = vpop.f32.mrf.mxu2  ;;  %v659_v34 = vpop.f32.mrf.mxu3 }
 0x130   :  { %v575_v52 = vpop.f32.mrf.mxu0  ;;  %v631_v59 = vadd.f32 %v630_v51, %v3306_v42  ;;  %v660_v19 = vadd.f32 %v659_v34, %v3306_v42 }
 0x131   :  { %v604_v2 = vpop.f32.mrf.mxu1  ;;  %2123 = vset.pattern.permute.xlu1 %v3812_v37 }
 0x133   :  { %v3302_v56 = vpop.permute.xlu1 %533 }
 0x134   :  { %v576_v0 = vadd.f32 %v575_v52, %v3302_v56  ;;  %v605_v57 = vadd.f32 %v604_v2, %v3302_v56 }
 0x138   :  { %v633_v31 = vpop.f32.mrf.mxu2  ;;  %v578_v49 = vpop.f32.mrf.mxu0 }
 0x139   :  { %v662_v44 = vpop.f32.mrf.mxu3  ;;  %v607_v63 = vpop.f32.mrf.mxu1  ;;  %v579_v33 = vadd.f32 %v578_v49, %v3296_v14  ;;  %v634_v53 = vadd.f32 %v633_v31, %v3302_v56 }
 0x13a   :  { %v608_v7 = vadd.f32 %v607_v63, %v3296_v14  ;;  %v663_v46 = vadd.f32 %v662_v44, %v3302_v56 }
 0x13b   :  { %2253 = vtanh.f32 %v579_v33 }
 0x13c   :  { %2255 = vtanh.f32 %v608_v7 }
 0x140   :  { %v636_v26 = vpop.f32.mrf.mxu2  ;;  %v581_v1 = vpop.f32.mrf.mxu0 }
 0x141   :  { %v665_v40 = vpop.f32.mrf.mxu3  ;;  %v582_v55 = vadd.f32 %v581_v1, %v3293_v3  ;;  %v610_v13 = vpop.f32.mrf.mxu1  ;;  %v637_v28 = vadd.f32 %v636_v26, %v3296_v14 }
 0x142   :  { %v611_v54 = vadd.f32 %v610_v13, %v3293_v3  ;;  %v2254_v32 = vpop.eup %2253  ;;  %v666_v22 = vadd.f32 %v665_v40, %v3296_v14 }
 0x143   :  { %2257 = vtanh.f32 %v582_v55  ;;  %v2256_v60 = vpop.eup %2255 }
 0x144   :  { %2259 = vtanh.f32 %v611_v54  ;;  %v1643_v54 = vld [vmem:[#allocation5 + $0x60] sm:$0xff] }
 0x145   :  { %2261 = vtanh.f32 %v576_v0  ;;  %1650 = vperm.xlu2 %2120, %v1643_v54  }
 0x146   :  { %2263 = vtanh.f32 %v605_v57 }
 0x147   :  { %2265 = vtanh.f32 %v573_v39 }
 0x148   :  { %v639_v17 = vpop.f32.mrf.mxu2  ;;  %v3311_v24 = vpop.f32.mrf.mxu0  ;;  %2267 = vtanh.f32 %v602_v23 }
 0x149   :  { %v640_v9 = vadd.f32 %v639_v17, %v3293_v3  ;;  %v668_v20 = vpop.f32.mrf.mxu3  ;;  %v3315_v27 = vpop.f32.mrf.mxu1  ;;  %v689_v2 = vadd.f32 %v3311_v24, %v3306_v42 }
 0x14a   :  { %v669_v38 = vadd.f32 %v668_v20, %v3293_v3  ;;  %v2258_v58 = vpop.eup %2257  ;;  %v718_v31 = vadd.f32 %v3315_v27, %v3306_v42 }
 0x14b   :  { %2269 = vtanh.f32 %v640_v9  ;;  %v2260_v30 = vpop.eup %2259  ;;  %1127 = vmatpush.msra.mxu0 %v2258_v58 }
 0x14c   :  { %2271 = vtanh.f32 %v669_v38  ;;  %v2262_v18 = vpop.eup %2261  ;;  %1156 = vmatpush.msra.mxu1 %v2260_v30 }
 0x14d   :  { %2273 = vtanh.f32 %v637_v28  ;;  %v2264_v4 = vpop.eup %2263  ;;  %1128 = vmatpush.msra.mxu0 %v2254_v32 }
 0x14e   :  { %2275 = vtanh.f32 %v666_v22  ;;  %v2266_v61 = vpop.eup %2265  ;;  %1157 = vmatpush.msra.mxu1 %v2256_v60 }
 0x14f   :  { %2277 = vtanh.f32 %v634_v53  ;;  %v2268_v41 = vpop.eup %2267  ;;  %1129 = vmatpush.msra.mxu0 %v2262_v18 }
 0x150   :  { %2279 = vtanh.f32 %v663_v46  ;;  %v3323_v45 = vpop.f32.mrf.mxu2  ;;  %v691_v6 = vpop.f32.mrf.mxu0  ;;  %1158 = vmatpush.msra.mxu1 %v2264_v4 }
 0x151   :  { %v2270_v16 = vpop.eup %2269  ;;  %2281 = vtanh.f32 %v631_v59  ;;  %v3325_v35 = vpop.f32.mrf.mxu3  ;;  %1130 = vmatpush.msra.mxu0 %v2266_v61  ;;  %v692_v55 = vadd.f32 %v691_v6, %v3302_v56  ;;  %v747_v30 = vadd.f32 %v3323_v45, %v3306_v42 }
 0x152   :  { %v720_v25 = vpop.f32.mrf.mxu1  ;;  %v2272_v43 = vpop.eup %2271  ;;  %2283 = vtanh.f32 %v660_v19  ;;  %1185 = vmatpush.msra.mxu2 %v2270_v16  ;;  %1159 = vmatpush.msra.mxu1 %v2268_v41  ;;  %v776_v18 = vadd.f32 %v3325_v35, %v3306_v42  ;;  %v1647_v16 = vld [vmem:[#allocation5 + $0x60] sm:$0x1] }
 0x153   :  { %v2274_v15 = vpop.eup %2273  ;;  %1214 = vmatpush.msra.mxu3 %v2272_v43  ;;  %2034 = vmatmul.msk.f32.vlgmr.msra.gmra.mxu0 %vm546_vm0, %v3291_v36  ;;  %2285 = vtanh.f32 %v689_v2  ;;  %v721_v13 = vadd.f32 %v720_v25, %v3302_v56 }
 0x154   :  { %v2276_v11 = vpop.eup %2275  ;;  %2038 = vmatmul.msk.f32.vlgmr.msra.gmra.mxu1 %vm546_vm0, %v3291_v36  ;;  %1186 = vmatpush.msra.mxu2 %v2274_v15  ;;  %2287 = vtanh.f32 %v718_v31 }
 0x155   :  { %v2278_v8 = vpop.eup %2277  ;;  %1215 = vmatpush.msra.mxu3 %v2276_v11  ;;  %1878 = vperm.xlu1 %2123, %v1647_v16  }
 0x156   :  { %v2280_v48 = vpop.eup %2279  ;;  %1187 = vmatpush.msra.mxu2 %v2278_v8 }
 0x157   :  { %v2282_v50 = vpop.eup %2281  ;;  %1216 = vmatpush.msra.mxu3 %v2280_v48 }
 0x158   :  { %v2284_v47 = vpop.eup %2283  ;;  %v749_v10 = vpop.f32.mrf.mxu2  ;;  %1188 = vmatpush.msra.mxu2 %v2282_v50 }
 0x159   :  { %v778_v51 = vpop.f32.mrf.mxu3  ;;  %1217 = vmatpush.msra.mxu3 %v2284_v47  ;;  %v694_v34 = vpop.f32.mrf.mxu0  ;;  %2042 = vmatmul.msk.f32.vlgmr.msra.gmra.mxu2 %vm546_vm0, %v3291_v36  ;;  %v750_v22 = vadd.f32 %v749_v10, %v3302_v56  ;;  %v1646_v47 = vld [vmem:[#allocation5 + $0x78] sm:$0xff] }
 0x15a   :  { %2046 = vmatmul.msk.f32.vlgmr.msra.gmra.mxu3 %vm546_vm0, %v3291_v36  ;;  %v723_v52 = vpop.f32.mrf.mxu1  ;;  %v695_v26 = vadd.f32 %v694_v34, %v3296_v14  ;;  %v2286_v57 = vpop.eup %2285  ;;  %v779_v58 = vadd.f32 %v778_v51, %v3302_v56  ;;  %1665 = vperm.xlu2 %2120, %v1646_v47  }
 0x15b   :  { %2035 = vmatmul.msk.f32.gmra.mxu0 %vm546_vm0, %v3132_v29  ;;  %v724_v40 = vadd.f32 %v723_v52, %v3296_v14  ;;  %v2288_v24 = vpop.eup %2287 }
 0x15c   :  { %2039 = vmatmul.msk.f32.gmra.mxu1 %vm546_vm0, %v3132_v29 }
 0x160   :  { %v752_v49 = vpop.f32.mrf.mxu2 }
 0x161   :  { %v781_v44 = vpop.f32.mrf.mxu3  ;;  %v697_v63 = vpop.f32.mrf.mxu0  ;;  %2043 = vmatmul.msk.f32.gmra.mxu2 %vm546_vm0, %v3132_v29  ;;  %v753_v32 = vadd.f32 %v752_v49, %v3296_v14 }
 0x162   :  { %2047 = vmatmul.msk.f32.gmra.mxu3 %vm546_vm0, %v3132_v29  ;;  %v698_v33 = vadd.f32 %v697_v63, %v3293_v3  ;;  %v726_v7 = vpop.f32.mrf.mxu1  ;;  %v782_v27 = vadd.f32 %v781_v44, %v3296_v14 }
 0x163   :  { %v727_v1 = vadd.f32 %v726_v7, %v3293_v3  ;;  %2036 = vmatmul.msk.f32.gmra.mxu0 %vm546_vm0, %v3206_v5 }
 0x164   :  { %2040 = vmatmul.msk.f32.gmra.mxu1 %vm546_vm0, %v3206_v5  ;;  %2289 = vtanh.f32 %v698_v33 }
 0x165   :  { %2291 = vtanh.f32 %v727_v1 }
 0x166   :  { %2293 = vtanh.f32 %v695_v26 }
 0x167   :  { %2295 = vtanh.f32 %v724_v40 }
 0x168   :  { %v755_v0 = vpop.f32.mrf.mxu2  ;;  %2297 = vtanh.f32 %v692_v55 }
 0x169   :  { %v756_v39 = vadd.f32 %v755_v0, %v3293_v3  ;;  %v784_v23 = vpop.f32.mrf.mxu3  ;;  %v3360_v17 = vpop.f32.mrf.mxu0  ;;  %2299 = vtanh.f32 %v721_v13  ;;  %2044 = vmatmul.msk.f32.gmra.mxu2 %vm546_vm0, %v3206_v5 }
 0x16a   :  { %v785_v28 = vadd.f32 %v784_v23, %v3293_v3  ;;  %2048 = vmatmul.msk.f32.gmra.mxu3 %vm546_vm0, %v3206_v5  ;;  %v3368_v9 = vpop.f32.mrf.mxu1  ;;  %v2290_v20 = vpop.eup %2289  ;;  %v805_v12 = vadd.f32 %v3360_v17, %v3306_v42 }
 0x16b   :  { %2301 = vtanh.f32 %v756_v39  ;;  %v2292_v60 = vpop.eup %2291  ;;  %2037 = vmatmul.msk.f32.gmra.mxu0 %vm546_vm0, %v3181_v62  ;;  %v834_v26 = vadd.f32 %v3368_v9, %v3306_v42 }
 0x16c   :  { %2303 = vtanh.f32 %v785_v28  ;;  %2041 = vmatmul.msk.f32.gmra.mxu1 %vm546_vm0, %v3181_v62  ;;  %v2294_v38 = vpop.eup %2293  ;;  %1243 = vmatpush.msrb.mxu0 %v2290_v20 }
 0x16d   :  { %1272 = vmatpush.msrb.mxu1 %v2292_v60  ;;  %v2296_v53 = vpop.eup %2295  ;;  %2305 = vtanh.f32 %v753_v32 }
 0x16e   :  { %v2298_v46 = vpop.eup %2297  ;;  %2307 = vtanh.f32 %v782_v27  ;;  %1244 = vmatpush.msrb.mxu0 %v2294_v38 }
 0x16f   :  { %1273 = vmatpush.msrb.mxu1 %v2296_v53  ;;  %v2300_v59 = vpop.eup %2299  ;;  %2309 = vtanh.f32 %v750_v22 }
 0x170   :  { %v3381_v4 = vpop.f32.mrf.mxu2  ;;  %2311 = vtanh.f32 %v779_v58  ;;  %1245 = vmatpush.msrb.mxu0 %v2298_v46 }
 0x171   :  { %v2302_v19 = vpop.eup %2301  ;;  %v3383_v61 = vpop.f32.mrf.mxu3  ;;  %1274 = vmatpush.msrb.mxu1 %v2300_v59  ;;  %2313 = vtanh.f32 %v747_v30  ;;  %2045 = vmatmul.msk.f32.gmra.mxu2 %vm546_vm0, %v3181_v62  ;;  %v863_v27 = vadd.f32 %v3381_v4, %v3306_v42 }
 0x172   :  { %v807_v21 = vpop.f32.mrf.mxu0  ;;  %v2304_v41 = vpop.eup %2303  ;;  %2049 = vmatmul.msk.f32.gmra.mxu3 %vm546_vm0, %v3181_v62  ;;  %2315 = vtanh.f32 %v776_v18  ;;  %1246 = vmatpush.msrb.mxu0 %v2286_v57  ;;  %v892_v22 = vadd.f32 %v3383_v61, %v3306_v42 }
 0x173   :  { %v836_v45 = vpop.f32.mrf.mxu1  ;;  %1275 = vmatpush.msrb.mxu1 %v2288_v24  ;;  %v2306_v6 = vpop.eup %2305  ;;  %1301 = vmatpush.msrb.mxu2 %v2302_v19  ;;  %2317 = vtanh.f32 %v805_v12  ;;  %v808_v44 = vadd.f32 %v807_v21, %v3302_v56 }
 0x174   :  { %1330 = vmatpush.msrb.mxu3 %v2304_v41  ;;  %v2308_v35 = vpop.eup %2307  ;;  %2050 = vmatmul.msk.f32.vlgmr.msrb.gmra.mxu0 %vm546_vm0, %v3291_v36  ;;  %v837_v33 = vadd.f32 %v836_v45, %v3302_v56 }
 0x175   :  { %2054 = vmatmul.msk.f32.vlgmr.msrb.gmra.mxu1 %vm546_vm0, %v3291_v36  ;;  %v2310_v25 = vpop.eup %2309  ;;  %1302 = vmatpush.msrb.mxu2 %v2306_v6 }
 0x176   :  { %1331 = vmatpush.msrb.mxu3 %v2308_v35  ;;  %v2312_v43 = vpop.eup %2311 }
 0x177   :  { %v2314_v15 = vpop.eup %2313  ;;  %1303 = vmatpush.msrb.mxu2 %v2310_v25 }
 0x178   :  { %1332 = vmatpush.msrb.mxu3 %v2312_v43  ;;  %v865_v11 = vpop.f32.mrf.mxu2  ;;  %v2316_v8 = vpop.eup %2315 }
 0x179   :  { %v894_v48 = vpop.f32.mrf.mxu3  ;;  %1304 = vmatpush.msrb.mxu2 %v2314_v15  ;;  %v2318_v13 = vpop.eup %2317  ;;  %v866_v32 = vadd.f32 %v865_v11, %v3302_v56 }
 0x17a   :  { %v810_v50 = vpop.f32.mrf.mxu0  ;;  %1333 = vmatpush.msrb.mxu3 %v2316_v8  ;;  %2058 = vmatmul.msk.f32.vlgmr.msrb.gmra.mxu2 %vm546_vm0, %v3291_v36  ;;  %v895_v9 = vadd.f32 %v894_v48, %v3302_v56 }
 0x17b   :  { %v839_v10 = vpop.f32.mrf.mxu1  ;;  %2062 = vmatmul.msk.f32.vlgmr.msrb.gmra.mxu3 %vm546_vm0, %v3291_v36  ;;  %v811_v31 = vadd.f32 %v810_v50, %v3296_v14 }
 0x17c   :  { %2051 = vmatmul.msk.f32.gmra.mxu0 %vm546_vm0, %v3132_v29  ;;  %v840_v63 = vadd.f32 %v839_v10, %v3296_v14 }
 0x17d   :  { %2055 = vmatmul.msk.f32.gmra.mxu1 %vm546_vm0, %v3132_v29 }
 0x180   :  { %v868_v37 = vpop.f32.mrf.mxu2 }
 0x181   :  { %v897_v51 = vpop.f32.mrf.mxu3  ;;  %v869_v39 = vadd.f32 %v868_v37, %v3296_v14 }
 0x182   :  { %v813_v34 = vpop.f32.mrf.mxu0  ;;  %2059 = vmatmul.msk.f32.gmra.mxu2 %vm546_vm0, %v3132_v29  ;;  %v898_v17 = vadd.f32 %v897_v51, %v3296_v14 }
 0x183   :  { %v814_v52 = vadd.f32 %v813_v34, %v3293_v3  ;;  %v842_v2 = vpop.f32.mrf.mxu1  ;;  %2063 = vmatmul.msk.f32.gmra.mxu3 %vm546_vm0, %v3132_v29 }
 0x184   :  { %v843_v49 = vadd.f32 %v842_v2, %v3293_v3  ;;  %2052 = vmatmul.msk.f32.gmra.mxu0 %vm546_vm0, %v3206_v5 }
 0x185   :  { %2319 = vtanh.f32 %v814_v52  ;;  %2056 = vmatmul.msk.f32.gmra.mxu1 %vm546_vm0, %v3206_v5 }
 0x186   :  { %2321 = vtanh.f32 %v843_v49 }
 0x187   :  { %2323 = vtanh.f32 %v811_v31 }
 0x188   :  { %2325 = vtanh.f32 %v808_v44  ;;  %v871_v7 = vpop.f32.mrf.mxu2 }
 0x189   :  { %2327 = vtanh.f32 %v840_v63  ;;  %v872_v1 = vadd.f32 %v871_v7, %v3293_v3  ;;  %v900_v40 = vpop.f32.mrf.mxu3 }
 0x18a   :  { %v3420_v55 = vpop.f32.mrf.mxu0  ;;  %2329 = vtanh.f32 %v837_v33  ;;  %v901_v54 = vadd.f32 %v900_v40, %v3293_v3  ;;  %2060 = vmatmul.msk.f32.gmra.mxu2 %vm546_vm0, %v3206_v5 }
 0x18b   :  { %v3423_v0 = vpop.f32.mrf.mxu1  ;;  %v2320_v57 = vpop.eup %2319  ;;  %2331 = vtanh.f32 %v872_v1  ;;  %2064 = vmatmul.msk.f32.gmra.mxu3 %vm546_vm0, %v3206_v5  ;;  %v921_v43 = vadd.f32 %v3420_v55, %v3306_v42 }
 0x18c   :  { %v2322_v23 = vpop.eup %2321  ;;  %2333 = vtanh.f32 %v901_v54  ;;  %1359 = vmatpush.msra.mxu0 %v2320_v57  ;;  %v950_v15 = vadd.f32 %v3423_v0, %v3306_v42 }
 0x18d   :  { %v2324_v24 = vpop.eup %2323  ;;  %2335 = vtanh.f32 %v834_v26  ;;  %2053 = vmatmul.msk.f32.gmra.mxu0 %vm546_vm0, %v3181_v62  ;;  %2057 = vmatmul.msk.f32.gmra.mxu1 %vm546_vm0, %v3181_v62 }
 0x18e   :  { %v2326_v28 = vpop.eup %2325  ;;  %1388 = vmatpush.msra.mxu1 %v2322_v23  ;;  %1360 = vmatpush.msra.mxu0 %v2324_v24  ;;  %2337 = vtanh.f32 %v869_v39 }
 0x18f   :  { %v2328_v20 = vpop.eup %2327  ;;  %2339 = vtanh.f32 %v898_v17 }
 0x190   :  { %v2330_v60 = vpop.eup %2329  ;;  %1389 = vmatpush.msra.mxu1 %v2328_v20  ;;  %v3441_v38 = vpop.f32.mrf.mxu2  ;;  %1361 = vmatpush.msra.mxu0 %v2326_v28  ;;  %2341 = vtanh.f32 %v866_v32  ;;  %v2509_v28 = vld [vmem:[#allocation5 + $0x48] sm:$0xff] }
 0x191   :  { %v2332_v58 = vpop.eup %2331  ;;  %v3443_v53 = vpop.f32.mrf.mxu3  ;;  %2343 = vtanh.f32 %v895_v9  ;;  %v979_v55 = vadd.f32 %v3441_v38, %v3306_v42 }
 0x192   :  { %v923_v30 = vpop.f32.mrf.mxu0  ;;  %v2334_v46 = vpop.eup %2333  ;;  %1390 = vmatpush.msra.mxu1 %v2330_v60  ;;  %1362 = vmatpush.msra.mxu0 %v2318_v13  ;;  %2345 = vtanh.f32 %v863_v27  ;;  %v1008_v0 = vadd.f32 %v3443_v53, %v3306_v42 }
 0x193   :  { %v952_v18 = vpop.f32.mrf.mxu1  ;;  %v2336_v59 = vpop.eup %2335  ;;  %2061 = vmatmul.msk.f32.gmra.mxu2 %vm546_vm0, %v3181_v62  ;;  %2065 = vmatmul.msk.f32.gmra.mxu3 %vm546_vm0, %v3181_v62  ;;  %2347 = vtanh.f32 %v892_v22  ;;  %v924_v51 = vadd.f32 %v923_v30, %v3302_v56 }
 0x194   :  { %1391 = vmatpush.msra.mxu1 %v2336_v59  ;;  %1417 = vmatpush.msra.mxu2 %v2332_v58  ;;  %v2338_v4 = vpop.eup %2337  ;;  %2349 = vtanh.f32 %v921_v43  ;;  %v953_v34 = vadd.f32 %v952_v18, %v3302_v56  ;;  %v3533_v22 = vpop.permute.xlu0 %1089 }
 0x195   :  { %1446 = vmatpush.msra.mxu3 %v2334_v46  ;;  %2066 = vmatmul.msk.f32.vlgmr.msra.gmra.mxu0 %vm546_vm0, %v3291_v36  ;;  %v2340_v19 = vpop.eup %2339  ;;  %2351 = vtanh.f32 %v950_v15  ;;  %v3539_v53 = vpop.permute.xlu1 %1094 }
 0x196   :  { %2070 = vmatmul.msk.f32.vlgmr.msra.gmra.mxu1 %vm546_vm0, %v3291_v36  ;;  %1418 = vmatpush.msra.mxu2 %v2338_v4  ;;  %v2342_v61 = vpop.eup %2341  ;;  %v3543_v4 = vpop.permute.xlu2 %1099 }
 0x197   :  { %1447 = vmatpush.msra.mxu3 %v2340_v19  ;;  %v2344_v21 = vpop.eup %2343 }
 0x198   :  { %1419 = vmatpush.msra.mxu2 %v2342_v61  ;;  %v981_v41 = vpop.f32.mrf.mxu2  ;;  %v2346_v45 = vpop.eup %2345 }
 0x199   :  { %1448 = vmatpush.msra.mxu3 %v2344_v21  ;;  %v1010_v6 = vpop.f32.mrf.mxu3  ;;  %v2348_v35 = vpop.eup %2347  ;;  %v982_v7 = vadd.f32 %v981_v41, %v3302_v56 }
 0x19a   :  { %v926_v16 = vpop.f32.mrf.mxu0  ;;  %1420 = vmatpush.msra.mxu2 %v2346_v45  ;;  %v2350_v2 = vpop.eup %2349  ;;  %v1011_v13 = vadd.f32 %v1010_v6, %v3302_v56 }
 0x19b   :  { %v955_v25 = vpop.f32.mrf.mxu1  ;;  %1449 = vmatpush.msra.mxu3 %v2348_v35  ;;  %2074 = vmatmul.msk.f32.vlgmr.msra.gmra.mxu2 %vm546_vm0, %v3291_v36  ;;  %v927_v10 = vadd.f32 %v926_v16, %v3296_v14  ;;  %v2352_v44 = vpop.eup %2351 }
 0x19c   :  { %2078 = vmatmul.msk.f32.vlgmr.msra.gmra.mxu3 %vm546_vm0, %v3291_v36  ;;  %v956_v37 = vadd.f32 %v955_v25, %v3296_v14  ;;  %v3553_v43 = vpop.permute.xlu0 %1655 }
 0x19d   :  { %2067 = vmatmul.msk.f32.gmra.mxu0 %vm546_vm0, %v3132_v29  ;;  %v3551_v45 = vpop.permute.xlu1 %1104 }
 0x19e   :  { %2071 = vmatmul.msk.f32.gmra.mxu1 %vm546_vm0, %v3132_v29 }
 0x19f   :  { %v3555_v15 = vpop.permute.xlu2 %1650 }
 0x1a0   :  { %v984_v11 = vpop.f32.mrf.mxu2 }
 0x1a1   :  { %v1013_v8 = vpop.f32.mrf.mxu3  ;;  %v985_v31 = vadd.f32 %v984_v11, %v3296_v14 }
 0x1a2   :  { %v929_v48 = vpop.f32.mrf.mxu0  ;;  %v1014_v1 = vadd.f32 %v1013_v8, %v3296_v14 }
 0x1a3   :  { %v930_v50 = vadd.f32 %v929_v48, %v3293_v3  ;;  %v958_v47 = vpop.f32.mrf.mxu1  ;;  %2075 = vmatmul.msk.f32.gmra.mxu2 %vm546_vm0, %v3132_v29 }
 0x1a4   :  { %v959_v12 = vadd.f32 %v958_v47, %v3293_v3  ;;  %2079 = vmatmul.msk.f32.gmra.mxu3 %vm546_vm0, %v3132_v29 }
 0x1a5   :  { %2353 = vtanh.f32 %v930_v50  ;;  %2068 = vmatmul.msk.f32.gmra.mxu0 %vm546_vm0, %v3206_v5 }
 0x1a6   :  { %2355 = vtanh.f32 %v959_v12  ;;  %2072 = vmatmul.msk.f32.gmra.mxu1 %vm546_vm0, %v3206_v5 }
 0x1a7   :  { %2357 = vtanh.f32 %v927_v10 }
 0x1a8   :  { %2359 = vtanh.f32 %v956_v37  ;;  %v987_v52 = vpop.f32.mrf.mxu2 }
 0x1a9   :  { %2361 = vtanh.f32 %v924_v51  ;;  %v988_v29 = vadd.f32 %v987_v52, %v3293_v3  ;;  %v1016_v49 = vpop.f32.mrf.mxu3 }
 0x1aa   :  { %2363 = vtanh.f32 %v953_v34  ;;  %v1017_v63 = vadd.f32 %v1016_v49, %v3293_v3  ;;  %v3563_v49 = vpop.permute.xlu1 %1660 }
 0x1ab   :  { %v2354_v33 = vpop.eup %2353  ;;  %2365 = vtanh.f32 %v988_v29  ;;  %2076 = vmatmul.msk.f32.gmra.mxu2 %vm546_vm0, %v3206_v5 }
 0x1ac   :  { %v2356_v26 = vpop.eup %2355  ;;  %2367 = vtanh.f32 %v1017_v63  ;;  %2080 = vmatmul.msk.f32.gmra.mxu3 %vm546_vm0, %v3206_v5  ;;  %1475 = vmatpush.msrb.mxu0 %v2354_v33 }
 0x1ad   :  { %v2358_v40 = vpop.eup %2357  ;;  %2369 = vtanh.f32 %v985_v31  ;;  %2069 = vmatmul.msk.f32.gmra.mxu0 %vm546_vm0, %v3181_v62  ;;  %1504 = vmatpush.msrb.mxu1 %v2356_v26 }
 0x1ae   :  { %v2360_v3 = vpop.eup %2359  ;;  %2073 = vmatmul.msk.f32.gmra.mxu1 %vm546_vm0, %v3181_v62  ;;  %1476 = vmatpush.msrb.mxu0 %v2358_v40  ;;  %2371 = vtanh.f32 %v982_v7 }
 0x1af   :  { %v2362_v14 = vpop.eup %2361  ;;  %1505 = vmatpush.msrb.mxu1 %v2360_v3  ;;  %2373 = vtanh.f32 %v1014_v1 }
 0x1b0   :  { %v2364_v54 = vpop.eup %2363  ;;  %1477 = vmatpush.msrb.mxu0 %v2362_v14  ;;  %2375 = vtanh.f32 %v979_v55 }
 0x1b1   :  { %v2366_v57 = vpop.eup %2365  ;;  %1506 = vmatpush.msrb.mxu1 %v2364_v54  ;;  %2377 = vtanh.f32 %v1011_v13 }
 0x1b2   :  { %v2368_v39 = vpop.eup %2367  ;;  %1478 = vmatpush.msrb.mxu0 %v2350_v2  ;;  %1533 = vmatpush.msrb.mxu2 %v2366_v57  ;;  %2379 = vtanh.f32 %v1008_v0 }
 0x1b3   :  { %v2370_v56 = vpop.eup %2369  ;;  %2077 = vmatmul.msk.f32.gmra.mxu2 %vm546_vm0, %v3181_v62  ;;  %1507 = vmatpush.msrb.mxu1 %v2352_v44 }
 0x1b4   :  { %2081 = vmatmul.msk.f32.gmra.mxu3 %vm546_vm0, %v3181_v62  ;;  %1534 = vmatpush.msrb.mxu2 %v2370_v56  ;;  %v2372_v42 = vpop.eup %2371  ;;  %v3571_v54 = vpop.permute.xlu2 %1665 }
 0x1b5   :  { %1562 = vmatpush.msrb.mxu3 %v2368_v39  ;;  %2082 = vmatmul.msk.f32.vlgmr.msrb.gmra.mxu0 %vm546_vm0, %v3291_v36  ;;  %v2374_v23 = vpop.eup %2373 }
 0x1b6   :  { %2086 = vmatmul.msk.f32.vlgmr.msrb.gmra.mxu1 %vm546_vm0, %v3291_v36  ;;  %1535 = vmatpush.msrb.mxu2 %v2372_v42  ;;  %v2376_v17 = vpop.eup %2375 }
 0x1b7   :  { %1563 = vmatpush.msrb.mxu3 %v2374_v23  ;;  %v2378_v24 = vpop.eup %2377 }
 0x1b8   :  { %1536 = vmatpush.msrb.mxu2 %v2376_v17  ;;  %v2380_v32 = vpop.eup %2379 }
 0x1b9   :  { %1564 = vmatpush.msrb.mxu3 %v2378_v24 }
 0x1bb   :  { %1565 = vmatpush.msrb.mxu3 %v2380_v32  ;;  %2090 = vmatmul.msk.f32.vlgmr.msrb.gmra.mxu2 %vm546_vm0, %v3291_v36 }
 0x1bc   :  { %2094 = vmatmul.msk.f32.vlgmr.msrb.gmra.mxu3 %vm546_vm0, %v3291_v36 }
 0x1bd   :  { %2083 = vmatmul.msk.f32.gmra.mxu0 %vm546_vm0, %v2509_v28 }
 0x1be   :  { %2087 = vmatmul.msk.f32.gmra.mxu1 %vm546_vm0, %v2509_v28 }
 0x1c3   :  { %2091 = vmatmul.msk.f32.gmra.mxu2 %vm546_vm0, %v2509_v28 }
 0x1c4   :  { %2095 = vmatmul.msk.f32.gmra.mxu3 %vm546_vm0, %v2509_v28 }
 0x1c5   :  { %2084 = vmatmul.msk.f32.gmra.mxu0 %vm546_vm0, %v3206_v5 }
 0x1c6   :  { %2088 = vmatmul.msk.f32.gmra.mxu1 %vm546_vm0, %v3206_v5 }
 0x1cb   :  { %2092 = vmatmul.msk.f32.gmra.mxu2 %vm546_vm0, %v3206_v5 }
 0x1cc   :  { %2096 = vmatmul.msk.f32.gmra.mxu3 %vm546_vm0, %v3206_v5 }
 0x1cd   :  { %2085 = vmatmul.msk.f32.gmra.mxu0 %vm546_vm0, %v3181_v62 }
 0x1ce   :  { %2089 = vmatmul.msk.f32.gmra.mxu1 %vm546_vm0, %v3181_v62 }
 0x1d0   :  { %v3525_v36 = vpop.f32.mrf.mxu0 }
 0x1d1   :  { %v3527_v9 = vpop.f32.mrf.mxu1  ;;  %v1133_v17 = vadd.f32 %v3525_v36, %v3533_v22 }
 0x1d2   :  { %v1162_v24 = vadd.f32 %v3527_v9, %v3533_v22 }
 0x1d3   :  { %2093 = vmatmul.msk.f32.gmra.mxu2 %vm546_vm0, %v3181_v62 }
 0x1d4   :  { %2097 = vmatmul.msk.f32.gmra.mxu3 %vm546_vm0, %v3181_v62 }
 0x1d8   :  { %v1135_v20 = vpop.f32.mrf.mxu0 }
 0x1d9   :  { %v1164_v27 = vpop.f32.mrf.mxu1  ;;  %v1136_v13 = vadd.f32 %v1135_v20, %v3539_v53 }
 0x1da   :  { %v1165_v14 = vadd.f32 %v1164_v27, %v3539_v53 }
 0x1dc   :  { %v1190_v60 = vpop.f32.mrf.mxu2 }
 0x1dd   :  { %v1219_v5 = vpop.f32.mrf.mxu3  ;;  %v1191_v30 = vadd.f32 %v1190_v60, %v3533_v22 }
 0x1de   :  { %v1220_v46 = vadd.f32 %v1219_v5, %v3533_v22 }
 0x1df   :  { %2381 = vtanh.f32 %v1191_v30 }
 0x1e0   :  { %v3535_v38 = vpop.f32.mrf.mxu0  ;;  %2383 = vtanh.f32 %v1220_v46 }
 0x1e1   :  { %v3537_v58 = vpop.f32.mrf.mxu1  ;;  %v1139_v60 = vadd.f32 %v3535_v38, %v3543_v4 }
 0x1e2   :  { %v1168_v5 = vadd.f32 %v3537_v58, %v3543_v4 }
 0x1e4   :  { %v1193_v18 = vpop.f32.mrf.mxu2 }
 0x1e5   :  { %v1222_v59 = vpop.f32.mrf.mxu3  ;;  %v1194_v62 = vadd.f32 %v1193_v18, %v3539_v53  ;;  %v2382_v41 = vpop.eup %2381 }
 0x1e6   :  { %v1223_v19 = vadd.f32 %v1222_v59, %v3539_v53  ;;  %v2384_v6 = vpop.eup %2383  ;;  %v1670_v50 = vmul.f32 %v2382_v41, %v3555_v15 }
 0x1e7   :  { %2385 = vtanh.f32 %v1194_v62  ;;  %v1671_v10 = vmul.f32 %v2384_v6, %v3555_v15 }
 0x1e8   :  { %2387 = vtanh.f32 %v1223_v19  ;;  %v3547_v61 = vpop.f32.mrf.mxu0 }
 0x1e9   :  { %v3549_v21 = vpop.f32.mrf.mxu1 }
 0x1ec   :  { %v1196_v16 = vpop.f32.mrf.mxu2 }
 0x1ed   :  { %v1225_v35 = vpop.f32.mrf.mxu3  ;;  %v2386_v25 = vpop.eup %2385  ;;  %v1197_v11 = vadd.f32 %v1196_v16, %v3543_v4  ;;  %v1142_v16 = vadd.f32 %v3547_v61, %v3551_v45 }
 0x1ee   :  { %v1226_v8 = vadd.f32 %v1225_v35, %v3543_v4  ;;  %v2388_v48 = vpop.eup %2387  ;;  %v1686_v47 = vmul.f32 %v2386_v25, %v3553_v43 }
 0x1ef   :  { %v1687_v12 = vmul.f32 %v2388_v48, %v3553_v43  ;;  %2389 = vtanh.f32 %v1197_v11  ;;  %v1171_v11 = vadd.f32 %v3549_v21, %v3551_v45 }
 0x1f0   :  { %v1750_v37 = vadd.f32 %v1686_v47, %v1670_v50  ;;  %2391 = vtanh.f32 %v1226_v8 }
 0x1f1   :  { %v1759_v51 = vadd.f32 %v1687_v12, %v1671_v10  ;;  %v1248_v34 = vpop.f32.mrf.mxu0 }
 0x1f2   :  { %v1277_v52 = vpop.f32.mrf.mxu1  ;;  %v1249_v10 = vadd.f32 %v1248_v34, %v3533_v22 }
 0x1f3   :  { %v1278_v12 = vadd.f32 %v1277_v52, %v3533_v22 }
 0x1f4   :  { %v1199_v2 = vpop.f32.mrf.mxu2 }
 0x1f5   :  { %v1228_v31 = vpop.f32.mrf.mxu3  ;;  %v2390_v29 = vpop.eup %2389  ;;  %v1200_v44 = vadd.f32 %v1199_v2, %v3551_v45 }
 0x1f6   :  { %v1229_v63 = vadd.f32 %v1228_v31, %v3551_v45  ;;  %v2392_v33 = vpop.eup %2391  ;;  %v1702_v7 = vmul.f32 %v2390_v29, %v3563_v49 }
 0x1f7   :  { %v1703_v26 = vmul.f32 %v2392_v33, %v3563_v49  ;;  %2393 = vtanh.f32 %v1200_v44 }
 0x1f8   :  { %v1751_v1 = vadd.f32 %v1750_v37, %v1702_v7  ;;  %2395 = vtanh.f32 %v1229_v63 }
 0x1f9   :  { %v1760_v40 = vadd.f32 %v1759_v51, %v1703_v26  ;;  %v1251_v55 = vpop.f32.mrf.mxu0  ;;  %2397 = vtanh.f32 %v1136_v13 }
 0x1fa   :  { %v1280_v3 = vpop.f32.mrf.mxu1  ;;  %2399 = vtanh.f32 %v1165_v14  ;;  %v1252_v61 = vadd.f32 %v1251_v55, %v3539_v53 }
 0x1fb   :  { %2401 = vtanh.f32 %v1133_v17  ;;  %v1281_v21 = vadd.f32 %v1280_v3, %v3539_v53 }
 0x1fc   :  { %2403 = vtanh.f32 %v1162_v24 }
 0x1fd   :  { %v2394_v0 = vpop.eup %2393  ;;  %v1306_v57 = vpop.f32.mrf.mxu2  ;;  %2405 = vtanh.f32 %v1139_v60 }
 0x1fe   :  { %v3573_v39 = vpop.f32.mrf.mxu3  ;;  %v2396_v56 = vpop.eup %2395  ;;  %v1718_v42 = vmul.f32 %v2394_v0, %v3571_v54  ;;  %2407 = vtanh.f32 %v1168_v5  ;;  %v1307_v34 = vadd.f32 %v1306_v57, %v3533_v22 }
 0x1ff   :  { %v1719_v23 = vmul.f32 %v2396_v56, %v3571_v54  ;;  %v2398_v30 = vpop.eup %2397  ;;  %2409 = vtanh.f32 %v1142_v16  ;;  %v1336_v57 = vadd.f32 %v3573_v39, %v3533_v22 }
 0x200   :  { %v3581_v32 = vadd.f32 %v1751_v1, %v1718_v42  ;;  %v2400_v9 = vpop.eup %2399  ;;  %v1684_v59 = vmul.f32 %v2398_v30, %v3553_v43  ;;  %2411 = vtanh.f32 %v1171_v11 }
 0x201   :  { %v3583_v28 = vadd.f32 %v1760_v40, %v1719_v23  ;;  %v1254_v20 = vpop.f32.mrf.mxu0  ;;  %v2402_v18 = vpop.eup %2401  ;;  %v1685_v6 = vmul.f32 %v2400_v9, %v3553_v43  ;;  %2413 = vtanh.f32 %v1249_v10 }
 0x202   :  { %v1283_v27 = vpop.f32.mrf.mxu1  ;;  %v2404_v62 = vpop.eup %2403  ;;  %v1668_v38 = vmul.f32 %v2402_v18, %v3555_v15  ;;  %2415 = vtanh.f32 %v1278_v12  ;;  %v1255_v52 = vadd.f32 %v1254_v20, %v3543_v4  ;;  %v1753_v0 = vrot.slane %v3581_v32, 4 }
 0x203   :  { %v1669_v58 = vmul.f32 %v2404_v62, %v3555_v15  ;;  %v2406_v25 = vpop.eup %2405  ;;  %2417 = vtanh.f32 %v1252_v61  ;;  %v1284_v33 = vadd.f32 %v1283_v27, %v3543_v4  ;;  %v1762_v17 = vrot.slane %v3583_v28, 4 }
 0x204   :  { %v1732_v35 = vadd.f32 %v1684_v59, %v1668_v38  ;;  %v2408_v48 = vpop.eup %2407  ;;  %v1700_v37 = vmul.f32 %v2406_v25, %v3563_v49  ;;  %2419 = vtanh.f32 %v1281_v21 }
 0x205   :  { %v1309_v36 = vpop.f32.mrf.mxu2  ;;  %v1741_v8 = vadd.f32 %v1685_v6, %v1669_v58  ;;  %v1701_v51 = vmul.f32 %v2408_v48, %v3563_v49  ;;  %v2410_v63 = vpop.eup %2409  ;;  %2421 = vtanh.f32 %v1307_v34  ;;  %v1754_v6 = vadd.f32 %v1753_v0, %v3581_v32 }
 0x206   :  { %v3589_v46 = vpop.f32.mrf.mxu3  ;;  %v1733_v29 = vadd.f32 %v1732_v35, %v1700_v37  ;;  %v2412_v1 = vpop.eup %2411  ;;  %v1310_v55 = vadd.f32 %v1309_v36, %v3539_v53  ;;  %2423 = vtanh.f32 %v1255_v52  ;;  %v1716_v13 = vmul.f32 %v2410_v63, %v3571_v54 }
 0x207   :  { %v1742_v44 = vadd.f32 %v1741_v8, %v1701_v51  ;;  %v2414_v14 = vpop.eup %2413  ;;  %2425 = vtanh.f32 %v1284_v33  ;;  %v1717_v42 = vmul.f32 %v2412_v1, %v3571_v54  ;;  %v1339_v5 = vadd.f32 %v3589_v46, %v3539_v53 }
 0x208   :  { %v2416_v23 = vpop.eup %2415  ;;  %v1734_v27 = vadd.f32 %v1733_v29, %v1716_v13  ;;  %v1672_v59 = vmul.f32 %v2414_v14, %v3555_v15  ;;  %v1763_v46 = vadd.f32 %v1762_v17, %v3583_v28  ;;  %v1755_v61 = vrot.slane %v1754_v6, 2 }
 0x209   :  { %v2418_v60 = vpop.eup %2417  ;;  %v1743_v39 = vadd.f32 %v1742_v44, %v1717_v42 }
 0x20a   :  { %v1257_v19 = vpop.f32.mrf.mxu0  ;;  %v1286_v41 = vpop.f32.mrf.mxu1  ;;  %v1735_v9 = vrot.slane %v1734_v27, 4  ;;  %v1688_v25 = vmul.f32 %v2418_v60, %v3553_v43  ;;  %v1764_v21 = vrot.slane %v1763_v46, 2 }
 0x20b   :  { %v1258_v40 = vadd.f32 %v1257_v19, %v3551_v45  ;;  %v1287_v3 = vadd.f32 %v1286_v41, %v3551_v45  ;;  %v2420_v30 = vpop.eup %2419  ;;  %v1744_v41 = vrot.slane %v1743_v39, 4  ;;  %v3653_v60 = vpop.permute.xlu1 %1878 }
 0x20c   :  { %v2422_v18 = vpop.eup %2421  ;;  %v1736_v16 = vadd.f32 %v1735_v9, %v1734_v27  ;;  %v1768_v63 = vadd.f32 %v1688_v25, %v1672_v59  ;;  %v1765_v17 = vadd.f32 %v1764_v21, %v1763_v46 }
 0x20d   :  { %v1312_v50 = vpop.f32.mrf.mxu2  ;;  %2427 = vtanh.f32 %v1258_v40  ;;  %v2424_v38 = vpop.eup %2423  ;;  %v1745_v8 = vadd.f32 %v1744_v41, %v1743_v39 }
 0x20e   :  { %v1341_v47 = vpop.f32.mrf.mxu3  ;;  %v1313_v24 = vadd.f32 %v1312_v50, %v3543_v4  ;;  %2429 = vtanh.f32 %v1310_v55  ;;  %v2426_v35 = vpop.eup %2425  ;;  %v1673_v50 = vmul.f32 %v2416_v23, %v3555_v15  ;;  %v1737_v32 = vrot.slane %v1736_v16, 2 }
 0x20f   :  { %2431 = vtanh.f32 %v1287_v3  ;;  %v1342_v62 = vadd.f32 %v1341_v47, %v3543_v4  ;;  %v1689_v47 = vmul.f32 %v2420_v30, %v3553_v43  ;;  %v1704_v28 = vmul.f32 %v2424_v38, %v3563_v49 }
 0x210   :  { %2433 = vtanh.f32 %v1336_v57  ;;  %v1746_v37 = vrot.slane %v1745_v8, 2  ;;  %v1705_v29 = vmul.f32 %v2426_v35, %v3563_v49  ;;  %v1738_v34 = vadd.f32 %v1737_v32, %v1736_v16 }
 0x211   :  { %2435 = vtanh.f32 %v1313_v24  ;;  %v1777_v1 = vadd.f32 %v1689_v47, %v1673_v50  ;;  %v1769_v3 = vadd.f32 %v1768_v63, %v1704_v28  ;;  %v1756_v23 = vadd.f32 %v1755_v61, %v1754_v6 }
 0x212   :  { %v3604_v2 = vpop.f32.mrf.mxu0  ;;  %2437 = vtanh.f32 %v1339_v5  ;;  %v1739_v40 = vrot.slane %v1738_v34, 1  ;;  %v1674_v24 = vmul.f32 %v2422_v18, %v3555_v15 }
 0x213   :  { %v3607_v31 = vpop.f32.mrf.mxu1  ;;  %v2428_v48 = vpop.eup %2427  ;;  %v1778_v27 = vadd.f32 %v1777_v1, %v1705_v29  ;;  %v1757_v25 = vrot.slane %v1756_v23, 1 }
 0x214   :  { %v2430_v10 = vpop.eup %2429  ;;  %v1720_v33 = vmul.f32 %v2428_v48, %v3571_v54  ;;  %v1740_v9 = vadd.f32 %v1739_v40, %v1738_v34  ;;  %v1365_v48 = vadd.f32 %v3604_v2, %v3533_v22 }
 0x215   :  { %v2432_v51 = vpop.eup %2431  ;;  %v1690_v13 = vmul.f32 %v2430_v10, %v3553_v43  ;;  %v1758_v1 = vadd.f32 %v1757_v25, %v1756_v23 }
 0x216   :  { %v1315_v7 = vpop.f32.mrf.mxu2  ;;  %v1344_v26 = vpop.f32.mrf.mxu3  ;;  %v1721_v14 = vmul.f32 %v2432_v51, %v3571_v54  ;;  %v1770_v30 = vadd.f32 %v1769_v3, %v1720_v33  ;;  %v1881_v10 = vadd.f32 %v3653_v60, %v1740_v9  ;;  %v1394_v51 = vadd.f32 %v3607_v31, %v3533_v22 }
 0x217   :  { %v1316_v36 = vadd.f32 %v1315_v7, %v3551_v45  ;;  %v1345_v11 = vadd.f32 %v1344_v26, %v3551_v45  ;;  %v2434_v52 = vpop.eup %2433  ;;  %v1747_v7 = vadd.f32 %v1746_v37, %v1745_v8  ;;  %v1786_v6 = vadd.f32 %v1690_v13, %v1674_v24 }
 0x218   :  { %v2436_v26 = vpop.eup %2435  ;;  %v1779_v46 = vadd.f32 %v1778_v27, %v1721_v14  ;;  %v1771_v47 = vrot.slane %v1770_v30, 4  ;;  %v1883_v24 = vadd.f32 %v3653_v60, %v1758_v1 }
 0x219   :  { %2439 = vtanh.f32 %v1316_v36  ;;  %v2438_v55 = vpop.eup %2437  ;;  %v1748_v57 = vrot.slane %v1747_v7, 1  ;;  %v1706_v36 = vmul.f32 %v2436_v26, %v3563_v49 }
 0x21a   :  { %v3619_v56 = vpop.f32.mrf.mxu0  ;;  %2441 = vtanh.f32 %v1342_v62  ;;  %v1675_v62 = vmul.f32 %v2434_v52, %v3555_v15  ;;  %v1691_v41 = vmul.f32 %v2438_v55, %v3553_v43  ;;  %v1780_v21 = vrot.slane %v1779_v46, 4 }
 0x21b   :  { %v3624_v20 = vpop.f32.mrf.mxu1  ;;  %2443 = vtanh.f32 %v1345_v11  ;;  %v1749_v59 = vadd.f32 %v1748_v57, %v1747_v7  ;;  %v1766_v11 = vrot.slane %v1765_v17, 1  ;;  %v1787_v32 = vadd.f32 %v1786_v6, %v1706_v36 }
 0x21c   :  { %v1795_v37 = vadd.f32 %v1691_v41, %v1675_v62  ;;  %v1368_v34 = vadd.f32 %v3619_v56, %v3539_v53  ;;  %v1397_v33 = vadd.f32 %v3624_v20, %v3539_v53  ;;  %v1772_v26 = vadd.f32 %v1771_v47, %v1770_v30 }
 0x21d   :  { %v1882_v35 = vadd.f32 %v3653_v60, %v1749_v59  ;;  %2445 = vtanh.f32 %v1365_v48  ;;  %v1767_v40 = vadd.f32 %v1766_v11, %v1765_v17  ;;  %v1781_v3 = vadd.f32 %v1780_v21, %v1779_v46 }
 0x21e   :  { %v3631_v19 = vpop.f32.mrf.mxu2  ;;  %2447 = vtanh.f32 %v1394_v51  ;;  %v1914_v62 = vrot.slane %v1883_v24, 6 }
 0x21f   :  { %v3635_v58 = vpop.f32.mrf.mxu3  ;;  %v2440_v42 = vpop.eup %2439  ;;  %v1913_v28 = vrot.slane %v1882_v35, 7  ;;  %v1423_v31 = vadd.f32 %v3631_v19, %v3533_v22  ;;  %2449 = vtanh.f32 %v1368_v34  ;;  %v1884_v27 = vadd.f32 %v3653_v60, %v1767_v40 }
 0x220   :  { %v2442_v39 = vpop.eup %2441  ;;  %v1722_v18 = vmul.f32 %v2440_v42, %v3571_v54  ;;  %v1452_v56 = vadd.f32 %v3635_v58, %v3533_v22  ;;  %2451 = vtanh.f32 %v1397_v33  ;;  %v1773_v42 = vrot.slane %v1772_v26, 2 }
 0x221   :  { %v2444_v38 = vpop.eup %2443  ;;  %v1707_v8 = vmul.f32 %v2442_v39, %v3563_v49  ;;  %v1928_v2 = vsel %vm1927_vm1, %v1881_v10, %v1913_v28  ;;  %2453 = vtanh.f32 %v1423_v31  ;;  %v1782_v58 = vrot.slane %v1781_v3, 2 }
 0x222   :  { %v3642_v12 = vpop.f32.mrf.mxu0  ;;  %v1723_v61 = vmul.f32 %v2444_v38, %v3571_v54  ;;  %v1788_v29 = vadd.f32 %v1787_v32, %v1722_v18  ;;  %2455 = vtanh.f32 %v1452_v56  ;;  %v1915_v41 = vrot.slane %v1884_v27, 5 }
 0x223   :  { %v3645_v44 = vpop.f32.mrf.mxu1  ;;  %v1796_v63 = vadd.f32 %v1795_v37, %v1707_v8  ;;  %v1371_v19 = vadd.f32 %v3642_v12, %v3543_v4  ;;  %v2446_v39 = vpop.eup %2445  ;;  %v1774_v6 = vadd.f32 %v1773_v42, %v1772_v26  ;;  %v1783_v28 = vadd.f32 %v1782_v58, %v1781_v3 }
 0x224   :  { %v1789_v13 = vrot.slane %v1788_v29, 4  ;;  %v1400_v20 = vadd.f32 %v3645_v44, %v3543_v4  ;;  %v2448_v9 = vpop.eup %2447  ;;  %v1930_v25 = vsel %vm1929_vm2, %v1914_v62, %v1915_v41 }
 0x225   :  { %v1797_v55 = vadd.f32 %v1796_v63, %v1723_v61  ;;  %v2450_v38 = vpop.eup %2449  ;;  %v3698_v32 = vsel %vm1931_vm3, %v1928_v2, %v1930_v25  ;;  %v1775_v61 = vrot.slane %v1774_v6, 1  ;;  %v1677_v34 = vmul.f32 %v2448_v9, %v3555_v15 }
 0x226   :  { %v3650_v0 = vpop.f32.mrf.mxu2  ;;  %v1790_v30 = vadd.f32 %v1789_v13, %v1788_v29  ;;  %2457 = vtanh.f32 %v1400_v20  ;;  %v2452_v18 = vpop.eup %2451  ;;  %v1784_v40 = vrot.slane %v1783_v28, 1  ;;  %v1692_v42 = vmul.f32 %v2450_v38, %v3553_v43 }
 0x227   :  { %v3655_v5 = vpop.f32.mrf.mxu3  ;;  %v1798_v23 = vrot.slane %v1797_v55, 4  ;;  %v1426_v44 = vadd.f32 %v3650_v0, %v3539_v53  ;;  %2459 = vtanh.f32 %v1371_v19  ;;  %v2454_v11 = vpop.eup %2453  ;;  %v1776_v56 = vadd.f32 %v1775_v61, %v1774_v6 }
 0x228   :  { %v1455_v12 = vadd.f32 %v3655_v5, %v3539_v53  ;;  %v1791_v48 = vrot.slane %v1790_v30, 2  ;;  %v2456_v10 = vpop.eup %2455 }
 0x229   :  { %v1799_v35 = vadd.f32 %v1798_v23, %v1797_v55  ;;  %v1679_v38 = vmul.f32 %v2456_v10, %v3555_v15 }
 0x22a   :  { %v3661_v16 = vpop.f32.mrf.mxu0  ;;  %v1792_v26 = vadd.f32 %v1791_v48, %v1790_v30 }
 0x22b   :  { %v1402_v50 = vpop.f32.mrf.mxu1  ;;  %v1374_v5 = vadd.f32 %v3661_v16, %v3551_v45  ;;  %v1800_v21 = vrot.slane %v1799_v35, 2 }
 0x22c   :  { %v1403_v17 = vadd.f32 %v1402_v50, %v3551_v45  ;;  %v2458_v51 = vpop.eup %2457  ;;  %v1793_v27 = vrot.slane %v1792_v26, 1 }
 0x22d   :  { %v2460_v29 = vpop.eup %2459  ;;  %v1709_v55 = vmul.f32 %v2458_v51, %v3563_v49 }
 0x22e   :  { %v1428_v52 = vpop.f32.mrf.mxu2  ;;  %2461 = vtanh.f32 %v1403_v17  ;;  %v1708_v6 = vmul.f32 %v2460_v29, %v3563_v49 }
 0x22f   :  { %v1457_v7 = vpop.f32.mrf.mxu3  ;;  %v1429_v46 = vadd.f32 %v1428_v52, %v3543_v4  ;;  %2463 = vtanh.f32 %v1426_v44  ;;  %v1693_v52 = vmul.f32 %v2452_v18, %v3553_v43 }
 0x230   :  { %v1458_v0 = vadd.f32 %v1457_v7, %v3543_v4  ;;  %2465 = vtanh.f32 %v1455_v12  ;;  %v1676_v7 = vmul.f32 %v2446_v39, %v3555_v15  ;;  %v1678_v39 = vmul.f32 %v2454_v11, %v3555_v15 }
 0x231   :  { %2467 = vtanh.f32 %v1429_v46  ;;  %v1813_v19 = vadd.f32 %v1693_v52, %v1677_v34 }
 0x232   :  { %v1480_v14 = vpop.f32.mrf.mxu0  ;;  %2469 = vtanh.f32 %v1458_v0  ;;  %v1804_v48 = vadd.f32 %v1692_v42, %v1676_v7 }
 0x233   :  { %v1509_v57 = vpop.f32.mrf.mxu1  ;;  %v1481_v16 = vadd.f32 %v1480_v14, %v3533_v22  ;;  %2471 = vtanh.f32 %v1374_v5  ;;  %v1801_v14 = vadd.f32 %v1800_v21, %v1799_v35  ;;  %v1814_v9 = vadd.f32 %v1813_v19, %v1709_v55 }
 0x234   :  { %v1510_v2 = vadd.f32 %v1509_v57, %v3533_v22  ;;  %v2462_v33 = vpop.eup %2461  ;;  %v1785_v5 = vadd.f32 %v1784_v40, %v1783_v28 }
 0x235   :  { %v2464_v1 = vpop.eup %2463  ;;  %v1725_v23 = vmul.f32 %v2462_v33, %v3571_v54  ;;  %v1802_v41 = vrot.slane %v1801_v14, 1 }
 0x236   :  { %v1431_v36 = vpop.f32.mrf.mxu2  ;;  %v2466_v13 = vpop.eup %2465  ;;  %v1694_v58 = vmul.f32 %v2464_v1, %v3553_v43 }
 0x237   :  { %v1460_v59 = vpop.f32.mrf.mxu3  ;;  %v1432_v50 = vadd.f32 %v1431_v36, %v3551_v45  ;;  %v2468_v57 = vpop.eup %2467  ;;  %v1695_v12 = vmul.f32 %v2466_v13, %v3553_v43  ;;  %v3720_v18 = vadd.f32 %v1814_v9, %v1725_v23  ;;  %v1803_v21 = vadd.f32 %v1802_v41, %v1801_v14 }
 0x238   :  { %v1461_v37 = vadd.f32 %v1460_v59, %v3551_v45  ;;  %v2470_v24 = vpop.eup %2469  ;;  %v1710_v35 = vmul.f32 %v2468_v57, %v3563_v49  ;;  %v1886_v13 = vadd.f32 %v3653_v60, %v1785_v5 }
 0x239   :  { %2473 = vtanh.f32 %v1432_v50  ;;  %v2472_v36 = vpop.eup %2471  ;;  %v1711_v0 = vmul.f32 %v2470_v24, %v3563_v49  ;;  %v1822_v50 = vadd.f32 %v1694_v58, %v1678_v39  ;;  %v1831_v10 = vadd.f32 %v1695_v12, %v1679_v38 }
 0x23a   :  { %v1483_v8 = vpop.f32.mrf.mxu0  ;;  %2475 = vtanh.f32 %v1461_v37  ;;  %v1724_v29 = vmul.f32 %v2472_v36, %v3571_v54  ;;  %v1816_v28 = vrot.slane %v3720_v18, 4  ;;  %v1917_v36 = vrot.slane %v1886_v13, 3 }
 0x23b   :  { %v1512_v47 = vpop.f32.mrf.mxu1  ;;  %v1484_v3 = vadd.f32 %v1483_v8, %v3539_v53  ;;  %2477 = vtanh.f32 %v1481_v16  ;;  %v1794_v8 = vadd.f32 %v1793_v27, %v1792_v26  ;;  %v3726_v16 = vadd.f32 %v1804_v48, %v1708_v6 }
 0x23c   :  { %v1513_v20 = vadd.f32 %v1512_v47, %v3539_v53  ;;  %2479 = vtanh.f32 %v1510_v2  ;;  %v1823_v2 = vadd.f32 %v1822_v50, %v1710_v35  ;;  %v1832_v33 = vadd.f32 %v1831_v10, %v1711_v0 }
 0x23d   :  { %2481 = vtanh.f32 %v1484_v3  ;;  %v1885_v26 = vadd.f32 %v3653_v60, %v1776_v56  ;;  %v1888_v12 = vadd.f32 %v3653_v60, %v1803_v21 }
 0x23e   :  { %v1538_v63 = vpop.f32.mrf.mxu2  ;;  %2483 = vtanh.f32 %v1513_v20 }
 0x23f   :  { %v3706_v31 = vpop.f32.mrf.mxu3  ;;  %v2474_v62 = vpop.eup %2473  ;;  %v1539_v61 = vadd.f32 %v1538_v63, %v3533_v22  ;;  %v1916_v58 = vrot.slane %v1885_v26, 4 }
 0x240   :  { %v2476_v46 = vpop.eup %2475  ;;  %v1726_v51 = vmul.f32 %v2474_v62, %v3571_v54  ;;  %v1568_v57 = vadd.f32 %v3706_v31, %v3533_v22 }
 0x241   :  { %v2478_v11 = vpop.eup %2477  ;;  %v1727_v34 = vmul.f32 %v2476_v46, %v3571_v54 }
 0x242   :  { %v1486_v17 = vpop.f32.mrf.mxu0  ;;  %v2480_v37 = vpop.eup %2479  ;;  %v1680_v40 = vmul.f32 %v2478_v11, %v3555_v15  ;;  %v1824_v20 = vadd.f32 %v1823_v2, %v1726_v51  ;;  %v1934_v11 = vsel %vm1933_vm4, %v1916_v58, %v1917_v36 }
 0x243   :  { %v1487_v30 = vadd.f32 %v1486_v17, %v3543_v4  ;;  %v1515_v44 = vpop.f32.mrf.mxu1  ;;  %v2482_v52 = vpop.eup %2481  ;;  %v1681_v63 = vmul.f32 %v2480_v37, %v3555_v15  ;;  %v1833_v19 = vadd.f32 %v1832_v33, %v1727_v34  ;;  %v1806_v37 = vadd.f32 %v3726_v16, %v1724_v29 }
 0x244   :  { %v1516_v59 = vadd.f32 %v1515_v44, %v3543_v4  ;;  %v2484_v1 = vpop.eup %2483  ;;  %v1696_v56 = vmul.f32 %v2482_v52, %v3553_v43  ;;  %v1887_v44 = vadd.f32 %v3653_v60, %v1794_v8 }
 0x245   :  { %2485 = vtanh.f32 %v1487_v30  ;;  %v1697_v24 = vmul.f32 %v2484_v1, %v3553_v43  ;;  %v1834_v38 = vrot.slane %v1833_v19, 4  ;;  %v1807_v13 = vrot.slane %v1806_v37, 4 }
 0x246   :  { %v1541_v25 = vpop.f32.mrf.mxu2  ;;  %2487 = vtanh.f32 %v1516_v59  ;;  %v1825_v59 = vrot.slane %v1824_v20, 4  ;;  %v1840_v62 = vadd.f32 %v1696_v56, %v1680_v40  ;;  %v1918_v46 = vrot.slane %v1887_v44, 2 }
 0x247   :  { %v1570_v47 = vpop.f32.mrf.mxu3  ;;  %2489 = vtanh.f32 %v1539_v61  ;;  %v1542_v23 = vadd.f32 %v1541_v25, %v3539_v53  ;;  %v1849_v6 = vadd.f32 %v1697_v24, %v1681_v63  ;;  %v1919_v25 = vrot.slane %v1888_v12, 1 }
 0x248   :  { %v1571_v27 = vadd.f32 %v1570_v47, %v3539_v53  ;;  %v1826_v10 = vadd.f32 %v1825_v59, %v1824_v20  ;;  %v1835_v52 = vadd.f32 %v1834_v38, %v1833_v19  ;;  %v1817_v40 = vadd.f32 %v1816_v28, %v3720_v18 }
 0x249   :  { %v1936_v50 = vsel %vm1935_vm5, %v1918_v46, %v1919_v25  ;;  %v1808_v58 = vadd.f32 %v1807_v13, %v1806_v37 }
 0x24a   :  { %v1489_v7 = vpop.f32.mrf.mxu0  ;;  %v1938_v21 = vsel %vm1937_vm6, %v1934_v11, %v1936_v50  ;;  %v1818_v56 = vrot.slane %v1817_v40, 2 }
 0x24b   :  { %v1490_v55 = vadd.f32 %v1489_v7, %v3551_v45  ;;  %v1518_v3 = vpop.f32.mrf.mxu1  ;;  %v2486_v14 = vpop.eup %2485  ;;  %v1940_v26 = vsel %vm1939_vm7, %v3698_v32, %v1938_v21  ;;  %v1836_v32 = vrot.slane %v1835_v52, 2 }
 0x24c   :  { %v1519_v42 = vadd.f32 %v1518_v3, %v3551_v45  ;;  %v2488_v17 = vpop.eup %2487  ;;  %v1712_v30 = vmul.f32 %v2486_v14, %v3563_v49  ;;  %1950 = vst [vmem:[#allocation7] sm:$0xff] %v1940_v26 }
 0x24d   :  { %2491 = vtanh.f32 %v1490_v55  ;;  %v1713_v53 = vmul.f32 %v2488_v17, %v3563_v49  ;;  %v2490_v41 = vpop.eup %2489 }
 0x24e   :  { %2493 = vtanh.f32 %v1519_v42  ;;  %v1544_v39 = vpop.f32.mrf.mxu2  ;;  %v1841_v0 = vadd.f32 %v1840_v62, %v1712_v30  ;;  %v1682_v18 = vmul.f32 %v2490_v41, %v3555_v15  ;;  %v1809_v41 = vrot.slane %v1808_v58, 2 }
 0x24f   :  { %v1545_v22 = vadd.f32 %v1544_v39, %v3543_v4  ;;  %v1573_v31 = vpop.f32.mrf.mxu3  ;;  %2495 = vtanh.f32 %v1568_v57  ;;  %v1850_v8 = vadd.f32 %v1849_v6, %v1713_v53  ;;  %v1827_v57 = vrot.slane %v1826_v10, 2 }
 0x250   :  { %v1574_v9 = vadd.f32 %v1573_v31, %v3543_v4  ;;  %2497 = vtanh.f32 %v1542_v23 }
 0x251   :  { %2499 = vtanh.f32 %v1571_v27  ;;  %v1828_v30 = vadd.f32 %v1827_v57, %v1826_v10 }
 0x252   :  { %2501 = vtanh.f32 %v1545_v22  ;;  %v1837_v22 = vadd.f32 %v1836_v32, %v1835_v52 }
 0x253   :  { %v2492_v35 = vpop.eup %2491  ;;  %2503 = vtanh.f32 %v1574_v9  ;;  %v1829_v38 = vrot.slane %v1828_v30, 1 }
 0x254   :  { %v2494_v4 = vpop.eup %2493  ;;  %v1728_v5 = vmul.f32 %v2492_v35, %v3571_v54 }
 0x255   :  { %v1729_v48 = vmul.f32 %v2494_v4, %v3571_v54  ;;  %v2496_v47 = vpop.eup %2495 }
 0x256   :  { %v1842_v51 = vadd.f32 %v1841_v0, %v1728_v5  ;;  %v1547_v61 = vpop.f32.mrf.mxu2  ;;  %v2498_v34 = vpop.eup %2497  ;;  %v1683_v28 = vmul.f32 %v2496_v47, %v3555_v15  ;;  %v1810_v5 = vadd.f32 %v1809_v41, %v1808_v58 }
 0x257   :  { %v1851_v2 = vadd.f32 %v1850_v8, %v1729_v48  ;;  %v1548_v33 = vadd.f32 %v1547_v61, %v3551_v45  ;;  %v1576_v7 = vpop.f32.mrf.mxu3  ;;  %v2500_v1 = vpop.eup %2499  ;;  %v1698_v14 = vmul.f32 %v2498_v34, %v3553_v43  ;;  %v1830_v8 = vadd.f32 %v1829_v38, %v1828_v30 }
 0x258   :  { %v1843_v16 = vrot.slane %v1842_v51, 4  ;;  %v1577_v29 = vadd.f32 %v1576_v7, %v3551_v45  ;;  %v2502_v63 = vpop.eup %2501  ;;  %v1699_v42 = vmul.f32 %v2500_v1, %v3553_v43  ;;  %v1819_v43 = vadd.f32 %v1818_v56, %v1817_v40 }
 0x259   :  { %v1852_v55 = vrot.slane %v1851_v2, 4  ;;  %2505 = vtanh.f32 %v1548_v33  ;;  %v2504_v3 = vpop.eup %2503  ;;  %v1714_v45 = vmul.f32 %v2502_v63, %v3563_v49  ;;  %v1858_v27 = vadd.f32 %v1698_v14, %v1682_v18 }
 0x25a   :  { %v1844_v20 = vadd.f32 %v1843_v16, %v1842_v51  ;;  %2507 = vtanh.f32 %v1577_v29  ;;  %v1715_v24 = vmul.f32 %v2504_v3, %v3563_v49  ;;  %v1867_v31 = vadd.f32 %v1699_v42, %v1683_v28 }
 0x25b   :  { %v1853_v19 = vadd.f32 %v1852_v55, %v1851_v2  ;;  %v1859_v36 = vadd.f32 %v1858_v27, %v1714_v45  ;;  %v1838_v49 = vrot.slane %v1837_v22, 1  ;;  %v1820_v35 = vrot.slane %v1819_v43, 1 }
 0x25c   :  { %v1845_v23 = vrot.slane %v1844_v20, 2  ;;  %v1868_v62 = vadd.f32 %v1867_v31, %v1715_v24  ;;  %v1811_v21 = vrot.slane %v1810_v5, 1  ;;  %v1891_v52 = vadd.f32 %v3653_v60, %v1830_v8 }
 0x25d   :  { %v1854_v17 = vrot.slane %v1853_v19, 2  ;;  %v1839_v48 = vadd.f32 %v1838_v49, %v1837_v22  ;;  %v1821_v37 = vadd.f32 %v1820_v35, %v1819_v43 }
 0x25e   :  { %v1846_v12 = vadd.f32 %v1845_v23, %v1844_v20  ;;  %v1812_v29 = vadd.f32 %v1811_v21, %v1810_v5  ;;  %v1921_v55 = vrot.slane %v1891_v52, 6 }
 0x25f   :  { %v2506_v39 = vpop.eup %2505  ;;  %v1855_v59 = vadd.f32 %v1854_v17, %v1853_v19  ;;  %v1892_v2 = vadd.f32 %v3653_v60, %v1839_v48  ;;  %v1890_v26 = vadd.f32 %v3653_v60, %v1821_v37 }
 0x260   :  { %v2508_v44 = vpop.eup %2507  ;;  %v1730_v9 = vmul.f32 %v2506_v39, %v3571_v54  ;;  %v1847_v0 = vrot.slane %v1846_v12, 1  ;;  %v1889_v19 = vadd.f32 %v3653_v60, %v1812_v29 }
 0x261   :  { %v1731_v15 = vmul.f32 %v2508_v44, %v3571_v54  ;;  %v1856_v25 = vrot.slane %v1855_v59, 1  ;;  %v1922_v3 = vrot.slane %v1892_v2, 5  ;;  %v1920_v20 = vrot.slane %v1890_v26, 7 }
 0x262   :  { %v1860_v53 = vadd.f32 %v1859_v36, %v1730_v9  ;;  %v1848_v10 = vadd.f32 %v1847_v0, %v1846_v12 }
 0x263   :  { %v1869_v6 = vadd.f32 %v1868_v62, %v1731_v15  ;;  %v1857_v51 = vadd.f32 %v1856_v25, %v1855_v59  ;;  %v1942_v18 = vsel %vm1929_vm2, %v1921_v55, %v1922_v3  ;;  %v1941_v45 = vsel %vm1927_vm1, %v1889_v19, %v1920_v20 }
 0x264   :  { %v1861_v46 = vrot.slane %v1860_v53, 4  ;;  %v1893_v1 = vadd.f32 %v3653_v60, %v1848_v10  ;;  %v1943_v17 = vsel %vm1931_vm3, %v1941_v45, %v1942_v18 }
 0x265   :  { %v1870_v11 = vrot.slane %v1869_v6, 4  ;;  %v1894_v40 = vadd.f32 %v3653_v60, %v1857_v51 }
 0x266   :  { %v1862_v4 = vadd.f32 %v1861_v46, %v1860_v53  ;;  %v1923_v57 = vrot.slane %v1893_v1, 4 }
 0x267   :  { %v1871_v50 = vadd.f32 %v1870_v11, %v1869_v6  ;;  %v1924_v32 = vrot.slane %v1894_v40, 3 }
 0x268   :  { %v1863_v47 = vrot.slane %v1862_v4, 2 }
 0x269   :  { %v1872_v54 = vrot.slane %v1871_v50, 2  ;;  %v1944_v28 = vsel %vm1933_vm4, %v1923_v57, %v1924_v32 }
 0x26a   :  { %v1864_v61 = vadd.f32 %v1863_v47, %v1862_v4 }
 0x26b   :  { %v1873_v34 = vadd.f32 %v1872_v54, %v1871_v50 }
 0x26c   :  { %v1865_v33 = vrot.slane %v1864_v61, 1 }
 0x26d   :  { %v1874_v7 = vrot.slane %v1873_v34, 1 }
 0x26e   :  { %v1866_v16 = vadd.f32 %v1865_v33, %v1864_v61 }
 0x26f   :  { %v1875_v63 = vadd.f32 %v1874_v7, %v1873_v34 }
 0x270   :  { %v1895_v13 = vadd.f32 %v3653_v60, %v1866_v16 }
 0x271   :  { %v1896_v14 = vadd.f32 %v3653_v60, %v1875_v63 }
 0x272   :  { %v1925_v42 = vrot.slane %v1895_v13, 2 }
 0x273   :  { %v1926_v56 = vrot.slane %v1896_v14, 1 }
 0x275   :  { %v1945_v23 = vsel %vm1935_vm5, %v1925_v42, %v1926_v56 }
 0x276   :  { %v1946_v24 = vsel %vm1937_vm6, %v1944_v28, %v1945_v23 }
 0x277   :  { %v1947_v60 = vsel %vm1939_vm7, %v1943_v17, %v1946_v24 }
 0x278   :  { %1951 = vst [vmem:[#allocation7 + $0x8] sm:$0xff] %v1947_v60 }
 0x279   :  { %1962 = dma.vmem_to_hbm [thread:$0]  %s1958_s1, 256, %s1960_s23, [#allocation4]  }
 0x27a   :  { %2586 = dma.done.wait [#allocation4], 256  }
 0x27b   :  { %2587 = vsyncadd [#allocation4], 4294967040 }
 0x27c   :  { %1967 = vsyncpa [#allocation3], 1 }
 0x27d   :  { %1968 = vsyncpa [#allocation6], 1 }
 0x27e   :  { %1969 = vsyncpa [#allocation4], 1 }

</bundles_post_ra>
